<compile_context>
chip_gen: v6e
topology: v6e:2x2x1
jax: 0.10.0
libtpu: 0.0.40
codegen_flags: <defaults>
</compile_context>

<pallas_src>
import functools

import jax
import jax.numpy as jnp
from jax.experimental import pallas as pl
from jax.experimental.pallas import tpu as pltpu


def _round_up(n, m):
    return (n + m - 1) // m * m


# -----------------------------------------------------------------------------
# Pallas kernel: one batch tile through the full encoder + decoder.
# Weights (bf16) and biases (f32) are full-array blocks resident across the
# whole grid; only x / decoded / encoded move per grid step.
# -----------------------------------------------------------------------------
def _autoencoder_kernel(
    x_ref,                      # (TB, in_dim)   f32  (cast to bf16 in-kernel)
    w1_ref, b1_ref,             # in_dim -> 512
    w2_ref, b2_ref,             # 512 -> 128
    wz_ref, bz_ref,             # 128 -> (latent_pad + 128) fused head+bottleneck
    w5_ref, b5_ref,             # 128 -> 512
    w6_ref, b6_ref,             # 512 -> in_dim
    decoded_ref,                # (TB, in_dim)     f32
    encoded_ref,                # (TB, latent_pad) f32 (cols >= latent are zero)
):
    f32 = jnp.float32
    bf16 = jnp.bfloat16

    x = x_ref[...].astype(bf16)                                       # in-kernel cast

    # ---------------- encoder ----------------
    h = jnp.dot(x, w1_ref[...], preferred_element_type=f32) + b1_ref[...]
    h = jnp.maximum(h, 0.0)
    h = jnp.dot(h.astype(bf16), w2_ref[...], preferred_element_type=f32) + b2_ref[...]
    h = jnp.maximum(h, 0.0)
    h_b = h.astype(bf16)                                              # (TB, 128)

    # ---- fused encoder head + (linear, pre-fused) latent bottleneck --------
    # One 256-wide MXU push: cols [:lp] = z (latent head, zero-padded),
    # cols [lp:] = decoder-hidden pre-activation.
    zz = jnp.dot(h_b, wz_ref[...], preferred_element_type=f32) + bz_ref[...]
    lp = encoded_ref.shape[1]
    encoded_ref[...] = zz[:, :lp].astype(encoded_ref.dtype)           # lane-dense store

    # ---------------- decoder ----------------
    d = jnp.maximum(zz[:, lp:], 0.0)
    d = jnp.dot(d.astype(bf16), w5_ref[...], preferred_element_type=f32) + b5_ref[...]
    d = jnp.maximum(d, 0.0)
    d = jnp.dot(d.astype(bf16), w6_ref[...], preferred_element_type=f32) + b6_ref[...]
    decoded_ref[...] = d.astype(decoded_ref.dtype)


# -----------------------------------------------------------------------------
# Parameter construction (deterministic, PyTorch-default-style uniform init).
# Weights are (in_features, out_features); biases kept 2D (1, out).
# -----------------------------------------------------------------------------
def init_params(key, input_dim=784, latent_dim=2, dtype=jnp.float32):
    dims = [
        (input_dim, 512),
        (512, 128),
        (128, latent_dim),
        (latent_dim, 128),
        (128, 512),
        (512, input_dim),
    ]
    params = []
    for (fan_in, fan_out) in dims:
        key, kw, kb = jax.random.split(key, 3)
        bound = fan_in ** -0.5
        w = jax.random.uniform(kw, (fan_in, fan_out), dtype, -bound, bound)
        b = jax.random.uniform(kb, (1, fan_out), dtype, -bound, bound)
        params.append((w, b))
    return params


# -----------------------------------------------------------------------------
# One-time parameter prep: bf16 weight cast, exact pre-fusion of the linear
# latent bottleneck (w34 = w3 @ w4, b34 = b3 @ w4 + b4, both in f32), and
# concatenation of the lane-padded encoder head with the fused bottleneck into
# one 256-wide matrix.
# -----------------------------------------------------------------------------
def prepare_params(params, weight_dtype=jnp.bfloat16):
    (w1, b1), (w2, b2), (w3, b3), (w4, b4), (w5, b5), (w6, b6) = params
    latent_dim = w3.shape[1]
    lat_pad = _round_up(latent_dim, 128)

    # No nonlinearity between layer 3 and layer 4 -> fuse them (exact in f32).
    w34 = w3 @ w4                      # (128, 128)
    b34 = b3 @ w4 + b4                 # (1, 128)

    # Lane-pad the encoder head and concatenate with the fused bottleneck.
    w3p = jnp.zeros((w3.shape[0], lat_pad), jnp.float32).at[:, :latent_dim].set(w3)
    b3p = jnp.zeros((1, lat_pad), jnp.float32).at[:, :latent_dim].set(b3)
    wz = jnp.concatenate([w3p, w34], axis=1)          # (128, lat_pad + 128)
    bz = jnp.concatenate([b3p, b34], axis=1)          # (1,   lat_pad + 128)

    c = lambda w: w.astype(weight_dtype)
    return (
        c(w1), b1.astype(jnp.float32),
        c(w2), b2.astype(jnp.float32),
        c(wz), bz.astype(jnp.float32),
        c(w5), b5.astype(jnp.float32),
        c(w6), b6.astype(jnp.float32),
    )


# -----------------------------------------------------------------------------
# Wrapper: flatten (like x.view(B, -1)), batch-tile, run the pallas_call,
# slice the encoded latent columns.  Returns (decoded, encoded) like torch.
# -----------------------------------------------------------------------------
@functools.partial(jax.jit, static_argnames=("latent_dim", "block_b"))
def custom_autoencoder_forward(x, prepared, *, latent_dim, block_b=1024):
    if x.ndim > 2:
        x = x.reshape(x.shape[0], -1)
    B, in_dim = x.shape

    w1, w2, wz, w5 = prepared[0], prepared[2], prepared[4], prepared[6]
    h1 = w1.shape[1]                       # 512
    h2 = w2.shape[1]                       # 128
    lat_pad = wz.shape[1] - w5.shape[0]    # 128 (latent dim padded to lanes)

    # Batch tiling.  Small batches run as a single full-array tile (legal even
    # when B is not a multiple of 8); large batches use TB rows, batch padded
    # to a multiple of TB.
    if B <= block_b:
        TB, B_pad = B, B
        xs = x
    else:
        TB = block_b                                   # multiple of 8
        B_pad = _round_up(B, TB)
        xs = jnp.pad(x, ((0, B_pad - B), (0, 0))) if B_pad != B else x
    grid = (B_pad // TB,)

    x_spec = pl.BlockSpec((TB, in_dim), lambda i: (i, 0))
    dec_spec = pl.BlockSpec((TB, in_dim), lambda i: (i, 0))
    enc_spec = pl.BlockSpec((TB, lat_pad), lambda i: (i, 0))
    # Weights/biases: full arrays, same block every step -> VMEM-resident.
    param_specs = [pl.BlockSpec(p.shape, lambda i: (0, 0)) for p in prepared]

    flops_per_row = 2 * (
        in_dim * h1 + h1 * h2 + h2 * wz.shape[1] + h2 * w5.shape[1]
        + w5.shape[1] * in_dim
    )
    weight_bytes = sum(int(p.size) * p.dtype.itemsize for p in prepared)
    bytes_accessed = int(
        weight_bytes
        + B_pad * in_dim * x.dtype.itemsize   # x in
        + B_pad * in_dim * 4                  # decoded out (f32)
        + B_pad * lat_pad * 4                 # encoded out (f32)
    )
    cost = pl.CostEstimate(
        flops=int(B_pad) * int(flops_per_row),
        transcendentals=0,
        bytes_accessed=bytes_accessed,
    )

    decoded_pad, encoded_pad = pl.pallas_call(
        _autoencoder_kernel,
        out_shape=(
            jax.ShapeDtypeStruct((B_pad, in_dim), jnp.float32),
            jax.ShapeDtypeStruct((B_pad, lat_pad), jnp.float32),
        ),
        grid=grid,
        in_specs=[x_spec] + param_specs,
        out_specs=(dec_spec, enc_spec),
        compiler_params=pltpu.CompilerParams(
            dimension_semantics=("parallel",),
            # TB=1024 double-buffered f32 I/O tiles + resident bf16 weights +
            # f32 intermediates ~ 25-30 MiB; raise the scoped limit (still
            # comfortably under v7x's 64 MiB physical per-TC VMEM).
            vmem_limit_bytes=48 * 1024 * 1024,
        ),
        cost_estimate=cost,
    )(xs, *prepared)

    decoded = decoded_pad if B_pad == B else decoded_pad[:B]
    encoded = encoded_pad[:B, :latent_dim]
    return decoded, encoded


# Pure-JAX reference computing the *same* math (bf16 weights, f32 accumulate,
# fused/concatenated bottleneck) for a tight correctness check.  Note: this is
# the bf16 formulation, not the f32 torch module (intentional precision choice).
def _reference_forward(x, prepared, latent_dim):
    if x.ndim > 2:
        x = x.reshape(x.shape[0], -1)
    w1, b1, w2, b2, wz, bz, w5, b5, w6, b6 = prepared
    bf16, f32 = jnp.bfloat16, jnp.float32
    dot = lambda a, b: jnp.dot(a, b, preferred_element_type=f32)
    lat_pad = wz.shape[1] - w5.shape[0]

    h = jnp.maximum(dot(x.astype(bf16), w1) + b1, 0.0)
    h = jnp.maximum(dot(h.astype(bf16), w2) + b2, 0.0)
    hb = h.astype(bf16)
    zz = dot(hb, wz) + bz
    z = zz[:, :latent_dim]
    d = jnp.maximum(zz[:, lat_pad:], 0.0)
    d = jnp.maximum(dot(d.astype(bf16), w5) + b5, 0.0)
    d = dot(d.astype(bf16), w6) + b6
    return d, z


if __name__ == "__main__":
    key = jax.random.PRNGKey(0)
    key, pkey, xkey = jax.random.split(key, 3)

    input_dim = 784    # 1 x 28 x 28
    latent_dim = 2
    batch = 2

    params = init_params(pkey, input_dim=input_dim, latent_dim=latent_dim)
    prepared = prepare_params(params)

    # NCHW image input (B, C, H, W) -> flattened inside the wrapper,
    # matching torch's x.view(x.size(0), -1).
    x = jax.random.normal(xkey, (batch, 1, 28, 28), dtype=jnp.float32)

    decoded, encoded = custom_autoencoder_forward(x, prepared, latent_dim=latent_dim)
    decoded = jax.block_until_ready(decoded)
    encoded = jax.block_until_ready(encoded)

    assert decoded.shape == (batch, input_dim), decoded.shape
    assert encoded.shape == (batch, latent_dim), encoded.shape

    ref_dec, ref_enc = _reference_forward(x, prepared, latent_dim)
    assert jnp.allclose(decoded, ref_dec, atol=2e-2, rtol=2e-2)
    assert jnp.allclose(encoded, ref_enc, atol=2e-2, rtol=2e-2)

    print("KERNEL_OK")
</pallas_src>

<mosaic_0001>
module attributes {stable_mosaic.version = 11 : i64} {
  func.func @_autoencoder_kernel(%arg0: i32, %arg1: memref<2x784xf32, #tpu.memory_space<vmem>>, %arg2: memref<784x512xbf16, #tpu.memory_space<vmem>>, %arg3: memref<1x512xf32, #tpu.memory_space<vmem>>, %arg4: memref<512x128xbf16, #tpu.memory_space<vmem>>, %arg5: memref<1x128xf32, #tpu.memory_space<vmem>>, %arg6: memref<128x256xbf16, #tpu.memory_space<vmem>>, %arg7: memref<1x256xf32, #tpu.memory_space<vmem>>, %arg8: memref<128x512xbf16, #tpu.memory_space<vmem>>, %arg9: memref<1x512xf32, #tpu.memory_space<vmem>>, %arg10: memref<512x784xbf16, #tpu.memory_space<vmem>>, %arg11: memref<1x784xf32, #tpu.memory_space<vmem>>, %arg12: memref<2x784xf32, #tpu.memory_space<vmem>>, %arg13: memref<2x128xf32, #tpu.memory_space<vmem>>) attributes {dimension_semantics = [#tpu.dimension_semantics<parallel>], iteration_bounds = array<i64: 1>, scalar_prefetch = 0 : i64, scratch_operands = 0 : i64, tpu.core_type = #tpu.core_type<tc>, window_params = [{transform_indices = @transform_0, window_bounds = array<i64: 2, 784>}, {pipeline_mode = #tpu.pipeline_mode<synchronous>, transform_indices = @transform_1, window_bounds = array<i64: 784, 512>}, {pipeline_mode = #tpu.pipeline_mode<synchronous>, transform_indices = @transform_2, window_bounds = array<i64: 1, 512>}, {pipeline_mode = #tpu.pipeline_mode<synchronous>, transform_indices = @transform_3, window_bounds = array<i64: 512, 128>}, {pipeline_mode = #tpu.pipeline_mode<synchronous>, transform_indices = @transform_4, window_bounds = array<i64: 1, 128>}, {pipeline_mode = #tpu.pipeline_mode<synchronous>, transform_indices = @transform_5, window_bounds = array<i64: 128, 256>}, {pipeline_mode = #tpu.pipeline_mode<synchronous>, transform_indices = @transform_6, window_bounds = array<i64: 1, 256>}, {pipeline_mode = #tpu.pipeline_mode<synchronous>, transform_indices = @transform_7, window_bounds = array<i64: 128, 512>}, {pipeline_mode = #tpu.pipeline_mode<synchronous>, transform_indices = @transform_8, window_bounds = array<i64: 1, 512>}, {pipeline_mode = #tpu.pipeline_mode<synchronous>, transform_indices = @transform_9, window_bounds = array<i64: 512, 784>}, {pipeline_mode = #tpu.pipeline_mode<synchronous>, transform_indices = @transform_10, window_bounds = array<i64: 1, 784>}, {transform_indices = @transform_11, window_bounds = array<i64: 2, 784>}, {transform_indices = @transform_12, window_bounds = array<i64: 2, 128>}]} {
    %c0 = arith.constant 0 : index
    %c0_0 = arith.constant 0 : index
    %0 = vector.load %arg1[%c0, %c0_0] : memref<2x784xf32, #tpu.memory_space<vmem>>, vector<2x784xf32>
    %1 = arith.truncf %0 : vector<2x784xf32> to vector<2x784xbf16>
    %c0_1 = arith.constant 0 : index
    %c0_2 = arith.constant 0 : index
    %2 = vector.load %arg2[%c0_1, %c0_2] : memref<784x512xbf16, #tpu.memory_space<vmem>>, vector<784x512xbf16>
    %cst = arith.constant dense<0.000000e+00> : vector<2x512xf32>
    %3 = tpu.matmul %1, %2, %cst {dimension_numbers = #tpu.dot_dimension_numbers<[1], [0], [0], [1], [0, 0, 1, 1], [], []>} : vector<2x784xbf16>, vector<784x512xbf16>, vector<2x512xf32> -> vector<2x512xf32>
    %c0_3 = arith.constant 0 : index
    %c0_4 = arith.constant 0 : index
    %4 = vector.load %arg3[%c0_3, %c0_4] : memref<1x512xf32, #tpu.memory_space<vmem>>, vector<1x512xf32>
    %5 = vector.broadcast %4 : vector<1x512xf32> to vector<2x512xf32>
    %6 = arith.addf %3, %5 : vector<2x512xf32>
    %cst_5 = arith.constant 0.000000e+00 : f32
    %7 = vector.broadcast %cst_5 : f32 to vector<2x512xf32>
    %8 = arith.maximumf %6, %7 : vector<2x512xf32>
    %9 = arith.truncf %8 : vector<2x512xf32> to vector<2x512xbf16>
    %c0_6 = arith.constant 0 : index
    %c0_7 = arith.constant 0 : index
    %10 = vector.load %arg4[%c0_6, %c0_7] : memref<512x128xbf16, #tpu.memory_space<vmem>>, vector<512x128xbf16>
    %cst_8 = arith.constant dense<0.000000e+00> : vector<2x128xf32>
    %11 = tpu.matmul %9, %10, %cst_8 {dimension_numbers = #tpu.dot_dimension_numbers<[1], [0], [0], [1], [0, 0, 1, 1], [], []>} : vector<2x512xbf16>, vector<512x128xbf16>, vector<2x128xf32> -> vector<2x128xf32>
    %c0_9 = arith.constant 0 : index
    %c0_10 = arith.constant 0 : index
    %12 = vector.load %arg5[%c0_9, %c0_10] : memref<1x128xf32, #tpu.memory_space<vmem>>, vector<1x128xf32>
    %13 = vector.broadcast %12 : vector<1x128xf32> to vector<2x128xf32>
    %14 = arith.addf %11, %13 : vector<2x128xf32>
    %cst_11 = arith.constant 0.000000e+00 : f32
    %15 = vector.broadcast %cst_11 : f32 to vector<2x128xf32>
    %16 = arith.maximumf %14, %15 : vector<2x128xf32>
    %17 = arith.truncf %16 : vector<2x128xf32> to vector<2x128xbf16>
    %c0_12 = arith.constant 0 : index
    %c0_13 = arith.constant 0 : index
    %18 = vector.load %arg6[%c0_12, %c0_13] : memref<128x256xbf16, #tpu.memory_space<vmem>>, vector<128x256xbf16>
    %cst_14 = arith.constant dense<0.000000e+00> : vector<2x256xf32>
    %19 = tpu.matmul %17, %18, %cst_14 {dimension_numbers = #tpu.dot_dimension_numbers<[1], [0], [0], [1], [0, 0, 1, 1], [], []>} : vector<2x128xbf16>, vector<128x256xbf16>, vector<2x256xf32> -> vector<2x256xf32>
    %c0_15 = arith.constant 0 : index
    %c0_16 = arith.constant 0 : index
    %20 = vector.load %arg7[%c0_15, %c0_16] : memref<1x256xf32, #tpu.memory_space<vmem>>, vector<1x256xf32>
    %21 = vector.broadcast %20 : vector<1x256xf32> to vector<2x256xf32>
    %22 = arith.addf %19, %21 : vector<2x256xf32>
    %23 = vector.extract_strided_slice %22 {offsets = [0, 0], sizes = [2, 128], strides = [1, 1]} : vector<2x256xf32> to vector<2x128xf32>
    %c0_17 = arith.constant 0 : index
    %c0_18 = arith.constant 0 : index
    %24 = vector.load %arg13[%c0_17, %c0_18] : memref<2x128xf32, #tpu.memory_space<vmem>>, vector<2x128xf32>
    tpu.vector_store %arg13[%c0_17, %c0_18], %23 {strides = array<i32>} : memref<2x128xf32, #tpu.memory_space<vmem>>, vector<2x128xf32>,
    %25 = vector.extract_strided_slice %22 {offsets = [0, 128], sizes = [2, 128], strides = [1, 1]} : vector<2x256xf32> to vector<2x128xf32>
    %cst_19 = arith.constant 0.000000e+00 : f32
    %26 = vector.broadcast %cst_19 : f32 to vector<2x128xf32>
    %27 = arith.maximumf %25, %26 : vector<2x128xf32>
    %28 = arith.truncf %27 : vector<2x128xf32> to vector<2x128xbf16>
    %c0_20 = arith.constant 0 : index
    %c0_21 = arith.constant 0 : index
    %29 = vector.load %arg8[%c0_20, %c0_21] : memref<128x512xbf16, #tpu.memory_space<vmem>>, vector<128x512xbf16>
    %cst_22 = arith.constant dense<0.000000e+00> : vector<2x512xf32>
    %30 = tpu.matmul %28, %29, %cst_22 {dimension_numbers = #tpu.dot_dimension_numbers<[1], [0], [0], [1], [0, 0, 1, 1], [], []>} : vector<2x128xbf16>, vector<128x512xbf16>, vector<2x512xf32> -> vector<2x512xf32>
    %c0_23 = arith.constant 0 : index
    %c0_24 = arith.constant 0 : index
    %31 = vector.load %arg9[%c0_23, %c0_24] : memref<1x512xf32, #tpu.memory_space<vmem>>, vector<1x512xf32>
    %32 = vector.broadcast %31 : vector<1x512xf32> to vector<2x512xf32>
    %33 = arith.addf %30, %32 : vector<2x512xf32>
    %cst_25 = arith.constant 0.000000e+00 : f32
    %34 = vector.broadcast %cst_25 : f32 to vector<2x512xf32>
    %35 = arith.maximumf %33, %34 : vector<2x512xf32>
    %36 = arith.truncf %35 : vector<2x512xf32> to vector<2x512xbf16>
    %c0_26 = arith.constant 0 : index
    %c0_27 = arith.constant 0 : index
    %37 = vector.load %arg10[%c0_26, %c0_27] : memref<512x784xbf16, #tpu.memory_space<vmem>>, vector<512x784xbf16>
    %cst_28 = arith.constant dense<0.000000e+00> : vector<2x784xf32>
    %38 = tpu.matmul %36, %37, %cst_28 {dimension_numbers = #tpu.dot_dimension_numbers<[1], [0], [0], [1], [0, 0, 1, 1], [], []>} : vector<2x512xbf16>, vector<512x784xbf16>, vector<2x784xf32> -> vector<2x784xf32>
    %c0_29 = arith.constant 0 : index
    %c0_30 = arith.constant 0 : index
    %39 = vector.load %arg11[%c0_29, %c0_30] : memref<1x784xf32, #tpu.memory_space<vmem>>, vector<1x784xf32>
    %40 = vector.broadcast %39 : vector<1x784xf32> to vector<2x784xf32>
    %41 = arith.addf %38, %40 : vector<2x784xf32>
    %c0_31 = arith.constant 0 : index
    %c0_32 = arith.constant 0 : index
    %42 = vector.load %arg12[%c0_31, %c0_32] : memref<2x784xf32, #tpu.memory_space<vmem>>, vector<2x784xf32>
    tpu.vector_store %arg12[%c0_31, %c0_32], %41 {strides = array<i32>} : memref<2x784xf32, #tpu.memory_space<vmem>>, vector<2x784xf32>,
    return
  }
  func.func @transform_0(%arg0: i32) -> (i32, i32) {
    %c0_i32 = arith.constant 0 : i32
    %c0_i32_0 = arith.constant 0 : i32
    return %arg0, %c0_i32 : i32, i32
  }
  func.func @transform_1(%arg0: i32) -> (i32, i32) {
    %c0_i32 = arith.constant 0 : i32
    %c0_i32_0 = arith.constant 0 : i32
    %c0_i32_1 = arith.constant 0 : i32
    return %c0_i32, %c0_i32_0 : i32, i32
  }
  func.func @transform_2(%arg0: i32) -> (i32, i32) {
    %c0_i32 = arith.constant 0 : i32
    %c0_i32_0 = arith.constant 0 : i32
    %c0_i32_1 = arith.constant 0 : i32
    return %c0_i32, %c0_i32_0 : i32, i32
  }
  func.func @transform_3(%arg0: i32) -> (i32, i32) {
    %c0_i32 = arith.constant 0 : i32
    %c0_i32_0 = arith.constant 0 : i32
    %c0_i32_1 = arith.constant 0 : i32
    return %c0_i32, %c0_i32_0 : i32, i32
  }
  func.func @transform_4(%arg0: i32) -> (i32, i32) {
    %c0_i32 = arith.constant 0 : i32
    %c0_i32_0 = arith.constant 0 : i32
    %c0_i32_1 = arith.constant 0 : i32
    return %c0_i32, %c0_i32_0 : i32, i32
  }
  func.func @transform_5(%arg0: i32) -> (i32, i32) {
    %c0_i32 = arith.constant 0 : i32
    %c0_i32_0 = arith.constant 0 : i32
    %c0_i32_1 = arith.constant 0 : i32
    return %c0_i32, %c0_i32_0 : i32, i32
  }
  func.func @transform_6(%arg0: i32) -> (i32, i32) {
    %c0_i32 = arith.constant 0 : i32
    %c0_i32_0 = arith.constant 0 : i32
    %c0_i32_1 = arith.constant 0 : i32
    return %c0_i32, %c0_i32_0 : i32, i32
  }
  func.func @transform_7(%arg0: i32) -> (i32, i32) {
    %c0_i32 = arith.constant 0 : i32
    %c0_i32_0 = arith.constant 0 : i32
    %c0_i32_1 = arith.constant 0 : i32
    return %c0_i32, %c0_i32_0 : i32, i32
  }
  func.func @transform_8(%arg0: i32) -> (i32, i32) {
    %c0_i32 = arith.constant 0 : i32
    %c0_i32_0 = arith.constant 0 : i32
    %c0_i32_1 = arith.constant 0 : i32
    return %c0_i32, %c0_i32_0 : i32, i32
  }
  func.func @transform_9(%arg0: i32) -> (i32, i32) {
    %c0_i32 = arith.constant 0 : i32
    %c0_i32_0 = arith.constant 0 : i32
    %c0_i32_1 = arith.constant 0 : i32
    return %c0_i32, %c0_i32_0 : i32, i32
  }
  func.func @transform_10(%arg0: i32) -> (i32, i32) {
    %c0_i32 = arith.constant 0 : i32
    %c0_i32_0 = arith.constant 0 : i32
    %c0_i32_1 = arith.constant 0 : i32
    return %c0_i32, %c0_i32_0 : i32, i32
  }
  func.func @transform_11(%arg0: i32) -> (i32, i32) {
    %c0_i32 = arith.constant 0 : i32
    %c0_i32_0 = arith.constant 0 : i32
    return %arg0, %c0_i32 : i32, i32
  }
  func.func @transform_12(%arg0: i32) -> (i32, i32) {
    %c0_i32 = arith.constant 0 : i32
    %c0_i32_0 = arith.constant 0 : i32
    return %arg0, %c0_i32 : i32, i32
  }
}

</mosaic_0001>

<bundles_post_ra>
// kernel: custom_autoencoder_forward.1
= control target key start
LH: loop header
LB: loop body
LE: loop exit
PB: predicated region body
PF: predicated region fallthrough
CT: control target
= control target key end

     0   :  { %18 = vsyncpa [#allocation3], 0  ;;  %v5640_v36 = vmov 1983009808   ;;  %v51_v38 = vlaneseq  ;;  %vm1292_vm0 = vcmask 130048   ;;  %s7352_s0 = inlined_call_operand.vmem [shape: f32[2,784], index: 0, kind: input, shape index: {}]   ;;  %s7353_s1 = inlined_call_operand.vmem [shape: bf16[784,512], index: 1, kind: input, shape index: {}]   ;;  %s7354_s2 = inlined_call_operand.vmem [shape: f32[1,512], index: 2, kind: input, shape index: {}]   ;;  %s7355_s3 = inlined_call_operand.vmem [shape: bf16[512,128], index: 3, kind: input, shape index: {}]   ;;  %s7356_s4 = inlined_call_operand.vmem [shape: f32[1,128], index: 4, kind: input, shape index: {}]   ;;  %s7357_s5 = inlined_call_operand.vmem [shape: bf16[128,256], index: 5, kind: input, shape index: {}]   ;;  %s7358_s6 = inlined_call_operand.vmem [shape: f32[1,256], index: 6, kind: input, shape index: {}]   ;;  %s7359_s7 = inlined_call_operand.vmem [shape: bf16[128,512], index: 7, kind: input, shape index: {}]   ;;  %s7360_s8 = inlined_call_operand.vmem [shape: f32[1,512], index: 8, kind: input, shape index: {}]   ;;  %s7361_s9 = inlined_call_operand.vmem [shape: bf16[512,784], index: 9, kind: input, shape index: {}]   ;;  %s7362_s10 = inlined_call_operand.vmem [shape: f32[1,784], index: 10, kind: input, shape index: {}]   ;;  %s7363_s11 = inlined_call_operand.hbm [shape: f32[2,784], index: 11, kind: output, shape index: {0}]   ;;  %s7364_s12 = inlined_call_operand.hbm [shape: f32[2,128], index: 12, kind: output, shape index: {1}]  }
   0x1   :  { %v4876_v0 = vld [vmem:[%s7353_s1 + $0xe4] ss:$16 sps:$4 sm:$0xff]   ;;  %v4880_v2 = vld [vmem:[%s7353_s1 + $0xe0] ss:$16 sps:$4 sm:$0xff]   ;;  %v49_v37 = vunpack.c.l.s4 %v5640_v36  ;;  %v4989_v36 = vld [vmem:[%s7353_s1 + $0xc8] ss:$16 sps:$4 sm:$0xff]  }
   0x2   :  { %v4878_v1 = vld [vmem:[%s7353_s1 + $0x2e4] ss:$16 sps:$4 sm:$0xff]   ;;  %1296 = vmatprep.subr.bf16.mxu0 %v4876_v0  ;;  %v4881_v3 = vld [vmem:[%s7353_s1 + $0x2e0] ss:$16 sps:$4 sm:$0xff]   ;;  %v5826_v43 = vshrl.u32 %v51_v38, 7 }
   0x3   :  { %1337 = vmatprep.subr.bf16.mxu1 %v4878_v1  ;;  %v4882_v4 = vld [vmem:[%s7353_s1 + $0xc4] ss:$16 sps:$4 sm:$0xff]   ;;  %1297 = vmatpush1.bf16.msra.mxu0 %v4880_v2  ;;  %v4886_v6 = vld [vmem:[%s7353_s1 + $0xc0] ss:$16 sps:$4 sm:$0xff]   ;;  %v50_v42 = vunpack.c.0.s8 %v49_v37  ;;  %v4997_v38 = vld [vmem:[%s7353_s1 + $0xac] ss:$16 sps:$4 sm:$0xff]  }
   0x4   :  { %1338 = vmatpush1.bf16.msra.mxu1 %v4881_v3  ;;  %v4884_v5 = vld [vmem:[%s7353_s1 + $0x2c4] ss:$16 sps:$4 sm:$0xff]   ;;  %1298 = vmatprep.subr.bf16.mxu0 %v4882_v4  ;;  %v4887_v7 = vld [vmem:[%s7353_s1 + $0x2c0] ss:$16 sps:$4 sm:$0xff]  }
   0x5   :  { %1339 = vmatprep.subr.bf16.mxu1 %v4884_v5  ;;  %v4888_v8 = vld [vmem:[%s7353_s1 + $0xa4] ss:$16 sps:$4 sm:$0xff]   ;;  %v4892_v10 = vld [vmem:[%s7353_s1 + $0xa0] ss:$16 sps:$4 sm:$0xff]   ;;  %v5844_v49 = vsub.s32 %v50_v42, %v5826_v43  ;;  %v5003_v42 = vld [vmem:[%s7353_s1 + $0x8c] ss:$16 sps:$4 sm:$0xff]  }
   0x6   :  { %v4890_v9 = vld [vmem:[%s7353_s1 + $0x2a4] ss:$16 sps:$4 sm:$0xff]   ;;  %v4893_v11 = vld [vmem:[%s7353_s1 + $0x2a0] ss:$16 sps:$4 sm:$0xff]  }
   0x7   :  { %1299 = vmatpush1.bf16.msra.mxu0 %v4886_v6  ;;  %v4894_v12 = vld [vmem:[%s7353_s1 + $0x84] ss:$16 sps:$4 sm:$0xff]   ;;  %v4898_v14 = vld [vmem:[%s7353_s1 + $0x80] ss:$16 sps:$4 sm:$0xff]  }
   0x8   :  { %1340 = vmatpush1.bf16.msra.mxu1 %v4887_v7  ;;  %1300 = vmatprep.subr.bf16.mxu0 %v4888_v8  ;;  %v4896_v13 = vld [vmem:[%s7353_s1 + $0x284] ss:$16 sps:$4 sm:$0xff]   ;;  %v4899_v15 = vld [vmem:[%s7353_s1 + $0x280] ss:$16 sps:$4 sm:$0xff]  }
   0x9   :  { %1341 = vmatprep.subr.bf16.mxu1 %v4890_v9  ;;  %v4900_v16 = vld [vmem:[%s7353_s1 + $0x64] ss:$16 sps:$4 sm:$0xff]   ;;  %v4904_v18 = vld [vmem:[%s7353_s1 + $0x60] ss:$16 sps:$4 sm:$0xff]  }
   0xa   :  { %v4902_v17 = vld [vmem:[%s7353_s1 + $0x264] ss:$16 sps:$4 sm:$0xff]   ;;  %v4905_v19 = vld [vmem:[%s7353_s1 + $0x260] ss:$16 sps:$4 sm:$0xff]  }
   0xb   :  { %1301 = vmatpush1.bf16.msra.mxu0 %v4892_v10  ;;  %v4906_v20 = vld [vmem:[%s7353_s1 + $0x44] ss:$16 sps:$4 sm:$0xff]   ;;  %v4910_v22 = vld [vmem:[%s7353_s1 + $0x40] ss:$16 sps:$4 sm:$0xff]  }
   0xc   :  { %1342 = vmatpush1.bf16.msra.mxu1 %v4893_v11  ;;  %1302 = vmatprep.subr.bf16.mxu0 %v4894_v12  ;;  %v4908_v21 = vld [vmem:[%s7353_s1 + $0x244] ss:$16 sps:$4 sm:$0xff]   ;;  %v4911_v23 = vld [vmem:[%s7353_s1 + $0x240] ss:$16 sps:$4 sm:$0xff]   ;;  %v44_v12 = vld [vmem:[%s7352_s0 + $0x8] sm:$0x3f] }
   0xd   :  { %1343 = vmatprep.subr.bf16.mxu1 %v4896_v13  ;;  %v4912_v24 = vld [vmem:[%s7353_s1 + $0x24] ss:$16 sps:$4 sm:$0xff]   ;;  %v4916_v26 = vld [vmem:[%s7353_s1 + $0x20] ss:$16 sps:$4 sm:$0xff]   ;;  %v5915_v13 = vrot.slane %v44_v12, %v5844_v49 }
   0xe   :  { %v4914_v25 = vld [vmem:[%s7353_s1 + $0x224] ss:$16 sps:$4 sm:$0xff]   ;;  %v4917_v27 = vld [vmem:[%s7353_s1 + $0x220] ss:$16 sps:$4 sm:$0xff]  }
   0xf   :  { %1303 = vmatpush1.bf16.msra.mxu0 %v4898_v14  ;;  %v4918_v28 = vld [vmem:[%s7353_s1 + $0x4] ss:$16 sps:$4 sm:$0xff]   ;;  %v4922_v30 = vld [vmem:[%s7353_s1] ss:$16 sps:$4 sm:$0xff]  }
  0x10   :  { %1344 = vmatpush1.bf16.msra.mxu1 %v4899_v15  ;;  %1304 = vmatprep.subr.bf16.mxu0 %v4900_v16  ;;  %v4920_v29 = vld [vmem:[%s7353_s1 + $0x204] ss:$16 sps:$4 sm:$0xff]   ;;  %v4923_v31 = vld [vmem:[%s7353_s1 + $0x200] ss:$16 sps:$4 sm:$0xff]  }
  0x11   :  { %1345 = vmatprep.subr.bf16.mxu1 %v4902_v17  ;;  %v4924_v32 = vld [vmem:[%s7353_s1 + $0x1e4] ss:$16 sps:$4 sm:$0xff]   ;;  %v4928_v34 = vld [vmem:[%s7353_s1 + $0x1e0] ss:$16 sps:$4 sm:$0xff]  }
  0x12   :  { %v4926_v33 = vld [vmem:[%s7353_s1 + $0x3e4] ss:$16 sps:$4 sm:$0xff]   ;;  %v4929_v35 = vld [vmem:[%s7353_s1 + $0x3e0] ss:$16 sps:$4 sm:$0xff]  }
  0x13   :  { %1305 = vmatpush1.bf16.msra.mxu0 %v4904_v18  ;;  %v4930_v39 = vld [vmem:[%s7353_s1 + $0x1c4] ss:$16 sps:$4 sm:$0xff]   ;;  %v4934_v41 = vld [vmem:[%s7353_s1 + $0x1c0] ss:$16 sps:$4 sm:$0xff]   ;;  %v79_v18 = vcombine.high %v5915_v13, %v5915_v13 }
  0x14   :  { %1346 = vmatpush1.bf16.msra.mxu1 %v4905_v19  ;;  %1306 = vmatprep.subr.bf16.mxu0 %v4906_v20  ;;  %v4932_v40 = vld [vmem:[%s7353_s1 + $0x3c4] ss:$16 sps:$4 sm:$0xff]   ;;  %v4935_v44 = vld [vmem:[%s7353_s1 + $0x3c0] ss:$16 sps:$4 sm:$0xff]  }
  0x15   :  { %1347 = vmatprep.subr.bf16.mxu1 %v4908_v21  ;;  %v4936_v45 = vld [vmem:[%s7353_s1 + $0x1a4] ss:$16 sps:$4 sm:$0xff]   ;;  %v4940_v47 = vld [vmem:[%s7353_s1 + $0x1a0] ss:$16 sps:$4 sm:$0xff]   ;;  %v64_v21 = vcombine.high %v44_v12, %v44_v12 }
  0x16   :  { %v4938_v46 = vld [vmem:[%s7353_s1 + $0x3a4] ss:$16 sps:$4 sm:$0xff]   ;;  %v4941_v48 = vld [vmem:[%s7353_s1 + $0x3a0] ss:$16 sps:$4 sm:$0xff]  }
  0x17   :  { %1307 = vmatpush1.bf16.msra.mxu0 %v4910_v22  ;;  %v4942_v50 = vld [vmem:[%s7353_s1 + $0x184] ss:$16 sps:$4 sm:$0xff]   ;;  %v4946_v53 = vld [vmem:[%s7353_s1 + $0x180] ss:$16 sps:$4 sm:$0xff]  }
  0x18   :  { %1348 = vmatpush1.bf16.msra.mxu1 %v4911_v23  ;;  %1308 = vmatprep.subr.bf16.mxu0 %v4912_v24  ;;  %v4944_v51 = vld [vmem:[%s7353_s1 + $0x384] ss:$16 sps:$4 sm:$0xff]   ;;  %v4947_v56 = vld [vmem:[%s7353_s1 + $0x380] ss:$16 sps:$4 sm:$0xff]  }
  0x19   :  { %1349 = vmatprep.subr.bf16.mxu1 %v4914_v25  ;;  %v43_v52 = vld [vmem:[%s7352_s0] sm:$0xff]  ;;  %v4984_v25 = vld [vmem:[%s7353_s1 + $0xec] ss:$16 sps:$4 sm:$0xff]  }
  0x1a   :  { %v54_v54 = vrot.slane %v43_v52, %v5844_v49  ;;  %v47_v55 = vcombine.high %v43_v52, %v43_v52  ;;  %v4948_v57 = vld [vmem:[%s7353_s1 + $0x164] ss:$16 sps:$4 sm:$0xff]   ;;  %v4952_v61 = vld [vmem:[%s7353_s1 + $0x160] ss:$16 sps:$4 sm:$0xff]   ;;  %v5015_v52 = vld [vmem:[%s7353_s1 + $0x4c] ss:$16 sps:$4 sm:$0xff]  }
  0x1b   :  { %1309 = vmatpush1.bf16.msra.mxu0 %v4916_v26  ;;  %v4950_v58 = vld [vmem:[%s7353_s1 + $0x364] ss:$16 sps:$4 sm:$0xff]   ;;  %v4953_v0 = vld [vmem:[%s7353_s1 + $0x360] ss:$16 sps:$4 sm:$0xff]   ;;  %v5947_v26 = vpack.c.bf16 %v79_v18, %v79_v18  ;;  %v5057_v18 = vld [vmem:[%s7353_s1 + $0x16c] ss:$16 sps:$4 sm:$0xff]  }
  0x1c   :  { %1350 = vmatpush1.bf16.msra.mxu1 %v4917_v27  ;;  %1310 = vmatprep.subr.bf16.mxu0 %v4918_v28  ;;  %v62_v59 = vcombine.high %v54_v54, %v54_v54  ;;  %v61_v60 = vrot.slane %v47_v55, %v5844_v49  ;;  %v4954_v1 = vld [vmem:[%s7353_s1 + $0x144] ss:$16 sps:$4 sm:$0xff]   ;;  %v4958_v4 = vld [vmem:[%s7353_s1 + $0x140] ss:$16 sps:$4 sm:$0xff]   ;;  %v5931_v19 = vpack.c.bf16 %v54_v54, %v54_v54  ;;  %v5013_v54 = vld [vmem:[%s7353_s1 + $0x48] ss:$16 sps:$4 sm:$0xff]  }
  0x1d   :  { %1351 = vmatprep.subr.bf16.mxu1 %v4920_v29  ;;  %v4956_v2 = vld [vmem:[%s7353_s1 + $0x344] ss:$16 sps:$4 sm:$0xff]   ;;  %v4959_v5 = vld [vmem:[%s7353_s1 + $0x340] ss:$16 sps:$4 sm:$0xff]   ;;  %v78_v27 = vrot.slane %v64_v21, %v5844_v49  ;;  %v5641_v29 = vmov 0  }
  0x1e   :  { %v5872_v62 = vpack.c.bf16 %v62_v59, %v62_v59  ;;  %v63_v63 = vcombine.high %v61_v60, %v61_v60  ;;  %v4960_v6 = vld [vmem:[%s7353_s1 + $0x124] ss:$16 sps:$4 sm:$0xff]   ;;  %v4964_v8 = vld [vmem:[%s7353_s1 + $0x120] ss:$16 sps:$4 sm:$0xff]   ;;  %v5933_v20 = vpack.c.bf16 %v61_v60, %v61_v60  ;;  %v5027_v60 = vld [vmem:[%s7353_s1 + $0xc] ss:$16 sps:$4 sm:$0xff]  }
  0x1f   :  { %1311 = vmatpush1.bf16.msra.mxu0 %v4922_v30  ;;  %v4962_v7 = vld [vmem:[%s7353_s1 + $0x324] ss:$16 sps:$4 sm:$0xff]   ;;  %v4965_v9 = vld [vmem:[%s7353_s1 + $0x320] ss:$16 sps:$4 sm:$0xff]  }
  0x20   :  { %1352 = vmatpush1.bf16.msra.mxu1 %v4923_v31  ;;  %1312 = vmatprep.subr.bf16.mxu0 %v4924_v32  ;;  %v5883_v3 = vpack.c.bf16 %v63_v63, %v63_v63  ;;  %v4966_v10 = vld [vmem:[%s7353_s1 + $0x104] ss:$16 sps:$4 sm:$0xff]   ;;  %v4970_v14 = vld [vmem:[%s7353_s1 + $0x100] ss:$16 sps:$4 sm:$0xff]   ;;  %v5960_v31 = vpack.c.bf16 %v78_v27, %v78_v27  ;;  %v4982_v32 = vld [vmem:[%s7353_s1 + $0xe8] ss:$16 sps:$4 sm:$0xff]  }
  0x21   :  { %1353 = vmatprep.subr.bf16.mxu1 %v4926_v33  ;;  %1328 = vmatprep.mubr.bf16.mxu0 %v5872_v62  ;;  %v4968_v11 = vld [vmem:[%s7353_s1 + $0x304] ss:$16 sps:$4 sm:$0xff]   ;;  %v4971_v15 = vld [vmem:[%s7353_s1 + $0x300] ss:$16 sps:$4 sm:$0xff]   ;;  %v5061_v27 = vld [vmem:[%s7353_s1 + $0x148] ss:$16 sps:$4 sm:$0xff]  }
  0x22   :  { %1369 = vmatprep.mubr.bf16.mxu1 %v5883_v3  ;;  %v4975_v16 = vld [vmem:[%s7353_s1 + $0x4e4] ss:$16 sps:$4 sm:$0xff]   ;;  %v4973_v22 = vld [vmem:[%s7353_s1 + $0x4e0] ss:$16 sps:$4 sm:$0xff]  }
  0x23   :  { %1313 = vmatpush2.bf16.msra.mxu0 %v4928_v34  ;;  %v4978_v17 = vld [vmem:[%s7353_s1 + $0x604] ss:$16 sps:$4 sm:$0xff]   ;;  %v4976_v23 = vld [vmem:[%s7353_s1 + $0x600] ss:$16 sps:$4 sm:$0xff]   ;;  %v4991_v34 = vld [vmem:[%s7353_s1 + $0xcc] ss:$16 sps:$4 sm:$0xff]  }
  0x24   :  { %1354 = vmatpush2.bf16.msra.mxu1 %v4929_v35  ;;  %1314 = vmatprep.subr.bf16.mxu0 %v4930_v39  ;;  %v4981_v24 = vld [vmem:[%s7353_s1 + $0x4c4] ss:$16 sps:$4 sm:$0xff]   ;;  %v4979_v28 = vld [vmem:[%s7353_s1 + $0x4c0] ss:$16 sps:$4 sm:$0xff]  }
  0x25   :  { %1355 = vmatprep.subr.bf16.mxu1 %v4932_v40  ;;  %v4987_v30 = vld [vmem:[%s7353_s1 + $0x4a4] ss:$16 sps:$4 sm:$0xff]   ;;  %v4985_v33 = vld [vmem:[%s7353_s1 + $0x4a0] ss:$16 sps:$4 sm:$0xff]   ;;  %v4995_v40 = vld [vmem:[%s7353_s1 + $0xa8] ss:$16 sps:$4 sm:$0xff]  }
  0x26   :  { %v4994_v35 = vld [vmem:[%s7353_s1 + $0x484] ss:$16 sps:$4 sm:$0xff]   ;;  %v4992_v37 = vld [vmem:[%s7353_s1 + $0x480] ss:$16 sps:$4 sm:$0xff]  }
  0x27   :  { %1315 = vmatpush2.bf16.msra.mxu0 %v4934_v41  ;;  %v5000_v39 = vld [vmem:[%s7353_s1 + $0x464] ss:$16 sps:$4 sm:$0xff]   ;;  %v4998_v41 = vld [vmem:[%s7353_s1 + $0x460] ss:$16 sps:$4 sm:$0xff]  }
  0x28   :  { %1356 = vmatpush2.bf16.msra.mxu1 %v4935_v44  ;;  %1316 = vmatprep.subr.bf16.mxu0 %v4936_v45  ;;  %v5006_v44 = vld [vmem:[%s7353_s1 + $0x444] ss:$16 sps:$4 sm:$0xff]   ;;  %v5001_v45 = vld [vmem:[%s7353_s1 + $0x88] ss:$16 sps:$4 sm:$0xff]   ;;  %v5016_v55 = vld [vmem:[%s7353_s1 + $0x400] ss:$16 sps:$4 sm:$0xff]  }
  0x29   :  { %1357 = vmatprep.subr.bf16.mxu1 %v4938_v46  ;;  %v5004_v46 = vld [vmem:[%s7353_s1 + $0x440] ss:$16 sps:$4 sm:$0xff]   ;;  %v5060_v21 = vld [vmem:[%s7353_s1 + $0x524] ss:$16 sps:$4 sm:$0xff]  }
  0x2a   :  { %v5022_v59 = vld [vmem:[%s7353_s1 + $0x5e0] ss:$16 sps:$4 sm:$0xff]  }
  0x2b   :  { %1317 = vmatpush2.bf16.msra.mxu0 %v4940_v47  ;;  %v5009_v47 = vld [vmem:[%s7353_s1 + $0x6c] ss:$16 sps:$4 sm:$0xff]   ;;  %v5028_v63 = vld [vmem:[%s7353_s1 + $0x5c0] ss:$16 sps:$4 sm:$0xff]  }
  0x2c   :  { %1358 = vmatpush2.bf16.msra.mxu1 %v4941_v48  ;;  %1318 = vmatprep.subr.bf16.mxu0 %v4942_v50  ;;  %v5012_v48 = vld [vmem:[%s7353_s1 + $0x424] ss:$16 sps:$4 sm:$0xff]   ;;  %v5007_v50 = vld [vmem:[%s7353_s1 + $0x68] ss:$16 sps:$4 sm:$0xff]   ;;  %v5046_v12 = vld [vmem:[%s7353_s1 + $0x560] ss:$16 sps:$4 sm:$0xff]  }
  0x2d   :  { %1359 = vmatprep.subr.bf16.mxu1 %v4944_v51  ;;  %v5010_v51 = vld [vmem:[%s7353_s1 + $0x420] ss:$16 sps:$4 sm:$0xff]  }
  0x2f   :  { %1319 = vmatpush2.bf16.msra.mxu0 %v4946_v53  ;;  %v5018_v53 = vld [vmem:[%s7353_s1 + $0x404] ss:$16 sps:$4 sm:$0xff]  }
  0x30   :  { %1360 = vmatpush2.bf16.msra.mxu1 %v4947_v56  ;;  %1320 = vmatprep.subr.bf16.mxu0 %v4948_v57  ;;  %v5021_v56 = vld [vmem:[%s7353_s1 + $0x2c] ss:$16 sps:$4 sm:$0xff]   ;;  %v5024_v57 = vld [vmem:[%s7353_s1 + $0x5e4] ss:$16 sps:$4 sm:$0xff]  }
  0x31   :  { %1361 = vmatprep.subr.bf16.mxu1 %v4950_v58  ;;  %v5019_v58 = vld [vmem:[%s7353_s1 + $0x28] ss:$16 sps:$4 sm:$0xff]  }
  0x33   :  { %1321 = vmatpush2.bf16.msra.mxu0 %v4952_v61  ;;  %v5030_v61 = vld [vmem:[%s7353_s1 + $0x5c4] ss:$16 sps:$4 sm:$0xff]  }
  0x34   :  { %1362 = vmatpush2.bf16.msra.mxu1 %v4953_v0  ;;  %1322 = vmatprep.subr.bf16.mxu0 %v4954_v1  ;;  %v5033_v0 = vld [vmem:[%s7353_s1 + $0x1ec] ss:$16 sps:$4 sm:$0xff]   ;;  %v5036_v1 = vld [vmem:[%s7353_s1 + $0x5a4] ss:$16 sps:$4 sm:$0xff]  }
  0x35   :  { %1363 = vmatprep.subr.bf16.mxu1 %v4956_v2  ;;  %v5031_v2 = vld [vmem:[%s7353_s1 + $0x1e8] ss:$16 sps:$4 sm:$0xff]  }
  0x37   :  { %1323 = vmatpush2.bf16.msra.mxu0 %v4958_v4  ;;  %v5034_v4 = vld [vmem:[%s7353_s1 + $0x5a0] ss:$16 sps:$4 sm:$0xff]  }
  0x38   :  { %1364 = vmatpush2.bf16.msra.mxu1 %v4959_v5  ;;  %1324 = vmatprep.subr.bf16.mxu0 %v4960_v6  ;;  %v5039_v5 = vld [vmem:[%s7353_s1 + $0x1cc] ss:$16 sps:$4 sm:$0xff]   ;;  %v5042_v6 = vld [vmem:[%s7353_s1 + $0x584] ss:$16 sps:$4 sm:$0xff]  }
  0x39   :  { %1365 = vmatprep.subr.bf16.mxu1 %v4962_v7  ;;  %v5037_v7 = vld [vmem:[%s7353_s1 + $0x1c8] ss:$16 sps:$4 sm:$0xff]  }
  0x3b   :  { %1325 = vmatpush2.bf16.msra.mxu0 %v4964_v8  ;;  %v5040_v8 = vld [vmem:[%s7353_s1 + $0x580] ss:$16 sps:$4 sm:$0xff]  }
  0x3c   :  { %1366 = vmatpush2.bf16.msra.mxu1 %v4965_v9  ;;  %1326 = vmatprep.subr.bf16.mxu0 %v4966_v10  ;;  %v5045_v9 = vld [vmem:[%s7353_s1 + $0x1ac] ss:$16 sps:$4 sm:$0xff]   ;;  %v5048_v10 = vld [vmem:[%s7353_s1 + $0x564] ss:$16 sps:$4 sm:$0xff]  }
  0x3d   :  { %1367 = vmatprep.subr.bf16.mxu1 %v4968_v11  ;;  %v5043_v11 = vld [vmem:[%s7353_s1 + $0x1a8] ss:$16 sps:$4 sm:$0xff]  }
  0x3f   :  { %1327 = vmatpush2.bf16.msra.mxu0 %v4970_v14  ;;  %v5051_v14 = vld [vmem:[%s7353_s1 + $0x18c] ss:$16 sps:$4 sm:$0xff]  }
  0x40   :  { %1368 = vmatpush2.bf16.msra.mxu1 %v4971_v15  ;;  %1378 = vmatprep.subr.bf16.mxu0 %v4975_v16  ;;  %v5054_v15 = vld [vmem:[%s7353_s1 + $0x544] ss:$16 sps:$4 sm:$0xff]   ;;  %v5049_v16 = vld [vmem:[%s7353_s1 + $0x188] ss:$16 sps:$4 sm:$0xff]  }
  0x41   :  { %1433 = vmatprep.subr.bf16.mxu1 %v4978_v17  ;;  %v5052_v17 = vld [vmem:[%s7353_s1 + $0x540] ss:$16 sps:$4 sm:$0xff]  }
  0x42   :  { %1329 = vmatmul.mubr.bf16.vlgmr.msra.gmra.mxu0 %v5931_v19 }
  0x43   :  { %1370 = vmatmul.mubr.bf16.vlgmr.msra.gmra.mxu1 %v5933_v20  ;;  %1379 = vmatpush1.bf16.msra.mxu0 %v4973_v22  ;;  %v5055_v22 = vld [vmem:[%s7353_s1 + $0x168] ss:$16 sps:$4 sm:$0xff]  }
  0x44   :  { %1434 = vmatpush1.bf16.msra.mxu1 %v4976_v23  ;;  %1380 = vmatprep.subr.bf16.mxu0 %v4981_v24  ;;  %v5058_v23 = vld [vmem:[%s7353_s1 + $0x520] ss:$16 sps:$4 sm:$0xff]   ;;  %v5063_v24 = vld [vmem:[%s7353_s1 + $0x14c] ss:$16 sps:$4 sm:$0xff]  }
  0x45   :  { %1451 = vmatprep.mubr.bf16.mxu1 %v5641_v29  ;;  %1460 = vmatprep.subr.bf16.mxu1 %v4984_v25  ;;  %v5066_v25 = vld [vmem:[%s7353_s1 + $0x504] ss:$16 sps:$4 sm:$0xff]  }
  0x46   :  { %1410 = vmatprep.mubr.bf16.mxu0 %v5947_v26 }
  0x47   :  { %1381 = vmatpush1.bf16.msra.mxu0 %v4979_v28  ;;  %v5064_v28 = vld [vmem:[%s7353_s1 + $0x500] ss:$16 sps:$4 sm:$0xff]  }
  0x48   :  { %1382 = vmatprep.subr.bf16.mxu0 %v4987_v30  ;;  %v5069_v30 = vld [vmem:[%s7353_s1 + $0x12c] ss:$16 sps:$4 sm:$0xff]  }
  0x4b   :  { %4477 = vmatmul.mubr.msk.bf16.vlgmr.msra.gmra.mxu1 %vm1292_vm0, %v5960_v31  ;;  %1383 = vmatpush1.bf16.msra.mxu0 %v4985_v33  ;;  %v6135_v33 = vpack.c.bf16 %v5915_v13, %v5915_v13  ;;  %v5078_v13 = vld [vmem:[%s7353_s1 + $0x2cc] ss:$16 sps:$4 sm:$0xff]  }
  0x4c   :  { %1461 = vmatpush1.bf16.msra.mxu1 %v4982_v32  ;;  %1384 = vmatprep.subr.bf16.mxu0 %v4994_v35  ;;  %v5072_v32 = vld [vmem:[%s7353_s1 + $0x2ec] ss:$16 sps:$4 sm:$0xff]   ;;  %v5070_v35 = vld [vmem:[%s7353_s1 + $0x2e8] ss:$16 sps:$4 sm:$0xff]  }
  0x4d   :  { %1462 = vmatprep.subr.bf16.mxu1 %v4991_v34  ;;  %1492 = vmatprep.mubr.bf16.mxu1 %v5872_v62  ;;  %v5025_v62 = vld [vmem:[%s7353_s1 + $0x8] ss:$16 sps:$4 sm:$0xff]  }
  0x4e   :  { %v5067_v34 = vld [vmem:[%s7353_s1 + $0x128] ss:$16 sps:$4 sm:$0xff]  }
  0x4f   :  { %1385 = vmatpush1.bf16.msra.mxu0 %v4992_v37  ;;  %v5073_v37 = vld [vmem:[%s7353_s1 + $0x108] ss:$16 sps:$4 sm:$0xff]  }
  0x50   :  { %1463 = vmatpush1.bf16.msra.mxu1 %v4989_v36  ;;  %1386 = vmatprep.subr.bf16.mxu0 %v5000_v39  ;;  %v5075_v36 = vld [vmem:[%s7353_s1 + $0x10c] ss:$16 sps:$4 sm:$0xff]  }
  0x51   :  { %1464 = vmatprep.subr.bf16.mxu1 %v4997_v38  ;;  %v5076_v38 = vld [vmem:[%s7353_s1 + $0x2c8] ss:$16 sps:$4 sm:$0xff]   ;;  %v5081_v39 = vld [vmem:[%s7353_s1 + $0x4ec] ss:$16 sps:$4 sm:$0xff]  }
  0x53   :  { %1387 = vmatpush1.bf16.msra.mxu0 %v4998_v41  ;;  %v5079_v41 = vld [vmem:[%s7353_s1 + $0x4e8] ss:$16 sps:$4 sm:$0xff]  }
  0x54   :  { %1465 = vmatpush1.bf16.msra.mxu1 %v4995_v40  ;;  %1388 = vmatprep.subr.bf16.mxu0 %v5006_v44  ;;  %v5084_v40 = vld [vmem:[%s7353_s1 + $0x2ac] ss:$16 sps:$4 sm:$0xff]  }
  0x55   :  { %1466 = vmatprep.subr.bf16.mxu1 %v5003_v42  ;;  %v5082_v42 = vld [vmem:[%s7353_s1 + $0x2a8] ss:$16 sps:$4 sm:$0xff]   ;;  %v5087_v44 = vld [vmem:[%s7353_s1 + $0x4cc] ss:$16 sps:$4 sm:$0xff]  }
  0x57   :  { %1389 = vmatpush1.bf16.msra.mxu0 %v5004_v46  ;;  %v5085_v46 = vld [vmem:[%s7353_s1 + $0x4c8] ss:$16 sps:$4 sm:$0xff]  }
  0x58   :  { %1467 = vmatpush1.bf16.msra.mxu1 %v5001_v45  ;;  %1390 = vmatprep.subr.bf16.mxu0 %v5012_v48  ;;  %v5090_v45 = vld [vmem:[%s7353_s1 + $0x28c] ss:$16 sps:$4 sm:$0xff]  }
  0x59   :  { %1468 = vmatprep.subr.bf16.mxu1 %v5009_v47  ;;  %v5093_v47 = vld [vmem:[%s7353_s1 + $0x4ac] ss:$16 sps:$4 sm:$0xff]  }
  0x5a   :  { %v5096_v48 = vld [vmem:[%s7353_s1 + $0x26c] ss:$16 sps:$4 sm:$0xff]  }
  0x5b   :  { %1391 = vmatpush1.bf16.msra.mxu0 %v5010_v51  ;;  %v5099_v51 = vld [vmem:[%s7353_s1 + $0x48c] ss:$16 sps:$4 sm:$0xff]  }
  0x5c   :  { %1469 = vmatpush1.bf16.msra.mxu1 %v5007_v50  ;;  %1392 = vmatprep.subr.bf16.mxu0 %v5018_v53  ;;  %v5091_v50 = vld [vmem:[%s7353_s1 + $0x4a8] ss:$16 sps:$4 sm:$0xff]  }
  0x5d   :  { %1470 = vmatprep.subr.bf16.mxu1 %v5015_v52  ;;  %v5102_v52 = vld [vmem:[%s7353_s1 + $0x24c] ss:$16 sps:$4 sm:$0xff]   ;;  %v5097_v53 = vld [vmem:[%s7353_s1 + $0x488] ss:$16 sps:$4 sm:$0xff]  }
  0x5f   :  { %1393 = vmatpush1.bf16.msra.mxu0 %v5016_v55  ;;  %v5108_v55 = vld [vmem:[%s7353_s1 + $0x22c] ss:$16 sps:$4 sm:$0xff]  }
  0x60   :  { %1471 = vmatpush1.bf16.msra.mxu1 %v5013_v54  ;;  %1394 = vmatprep.subr.bf16.mxu0 %v5024_v57  ;;  %v5105_v54 = vld [vmem:[%s7353_s1 + $0x46c] ss:$16 sps:$4 sm:$0xff]   ;;  %v5106_v57 = vld [vmem:[%s7353_s1 + $0x228] ss:$16 sps:$4 sm:$0xff]  }
  0x61   :  { %1472 = vmatprep.subr.bf16.mxu1 %v5021_v56  ;;  %v5103_v56 = vld [vmem:[%s7353_s1 + $0x468] ss:$16 sps:$4 sm:$0xff]  }
  0x63   :  { %1395 = vmatpush2.bf16.msra.mxu0 %v5022_v59  ;;  %v5114_v59 = vld [vmem:[%s7353_s1 + $0x20c] ss:$16 sps:$4 sm:$0xff]  }
  0x64   :  { %1473 = vmatpush1.bf16.msra.mxu1 %v5019_v58  ;;  %1396 = vmatprep.subr.bf16.mxu0 %v5030_v61  ;;  %v5111_v58 = vld [vmem:[%s7353_s1 + $0x44c] ss:$16 sps:$4 sm:$0xff]   ;;  %v5112_v61 = vld [vmem:[%s7353_s1 + $0x208] ss:$16 sps:$4 sm:$0xff]  }
  0x65   :  { %1474 = vmatprep.subr.bf16.mxu1 %v5027_v60  ;;  %v5109_v60 = vld [vmem:[%s7353_s1 + $0x448] ss:$16 sps:$4 sm:$0xff]  }
  0x67   :  { %1397 = vmatpush2.bf16.msra.mxu0 %v5028_v63  ;;  %v5120_v63 = vld [vmem:[%s7353_s1 + $0x3ec] ss:$16 sps:$4 sm:$0xff]  }
  0x68   :  { %1475 = vmatpush1.bf16.msra.mxu1 %v5025_v62  ;;  %1398 = vmatprep.subr.bf16.mxu0 %v5036_v1  ;;  %v5117_v62 = vld [vmem:[%s7353_s1 + $0x42c] ss:$16 sps:$4 sm:$0xff]   ;;  %v5118_v1 = vld [vmem:[%s7353_s1 + $0x3e8] ss:$16 sps:$4 sm:$0xff]  }
  0x69   :  { %1476 = vmatprep.subr.bf16.mxu1 %v5033_v0  ;;  %v5115_v0 = vld [vmem:[%s7353_s1 + $0x428] ss:$16 sps:$4 sm:$0xff]  }
  0x6b   :  { %1399 = vmatpush2.bf16.msra.mxu0 %v5034_v4  ;;  %v5126_v4 = vld [vmem:[%s7353_s1 + $0x3cc] ss:$16 sps:$4 sm:$0xff]  }
  0x6c   :  { %1477 = vmatpush2.bf16.msra.mxu1 %v5031_v2  ;;  %1400 = vmatprep.subr.bf16.mxu0 %v5042_v6  ;;  %v5123_v2 = vld [vmem:[%s7353_s1 + $0x40c] ss:$16 sps:$4 sm:$0xff]   ;;  %v5124_v6 = vld [vmem:[%s7353_s1 + $0x3c8] ss:$16 sps:$4 sm:$0xff]  }
  0x6d   :  { %1478 = vmatprep.subr.bf16.mxu1 %v5039_v5  ;;  %v5121_v5 = vld [vmem:[%s7353_s1 + $0x408] ss:$16 sps:$4 sm:$0xff]  }
  0x6f   :  { %1401 = vmatpush2.bf16.msra.mxu0 %v5040_v8  ;;  %v5132_v8 = vld [vmem:[%s7353_s1 + $0x3ac] ss:$16 sps:$4 sm:$0xff]  }
  0x70   :  { %1479 = vmatpush2.bf16.msra.mxu1 %v5037_v7  ;;  %1402 = vmatprep.subr.bf16.mxu0 %v5048_v10  ;;  %v5129_v7 = vld [vmem:[%s7353_s1 + $0x5ec] ss:$16 sps:$4 sm:$0xff]   ;;  %v5130_v10 = vld [vmem:[%s7353_s1 + $0x3a8] ss:$16 sps:$4 sm:$0xff]  }
  0x71   :  { %1480 = vmatprep.subr.bf16.mxu1 %v5045_v9  ;;  %v5127_v9 = vld [vmem:[%s7353_s1 + $0x5e8] ss:$16 sps:$4 sm:$0xff]  }
  0x73   :  { %1403 = vmatpush2.bf16.msra.mxu0 %v5046_v12  ;;  %v5138_v12 = vld [vmem:[%s7353_s1 + $0x38c] ss:$16 sps:$4 sm:$0xff]  }
  0x74   :  { %1481 = vmatpush2.bf16.msra.mxu1 %v5043_v11  ;;  %1404 = vmatprep.subr.bf16.mxu0 %v5054_v15  ;;  %v5135_v11 = vld [vmem:[%s7353_s1 + $0x5cc] ss:$16 sps:$4 sm:$0xff]   ;;  %v5136_v15 = vld [vmem:[%s7353_s1 + $0x388] ss:$16 sps:$4 sm:$0xff]  }
  0x75   :  { %1482 = vmatprep.subr.bf16.mxu1 %v5051_v14  ;;  %v5133_v14 = vld [vmem:[%s7353_s1 + $0x5c8] ss:$16 sps:$4 sm:$0xff]  }
  0x77   :  { %1405 = vmatpush2.bf16.msra.mxu0 %v5052_v17  ;;  %v5144_v17 = vld [vmem:[%s7353_s1 + $0x36c] ss:$16 sps:$4 sm:$0xff]  }
  0x78   :  { %1483 = vmatpush2.bf16.msra.mxu1 %v5049_v16  ;;  %1406 = vmatprep.subr.bf16.mxu0 %v5060_v21  ;;  %v5141_v16 = vld [vmem:[%s7353_s1 + $0x5ac] ss:$16 sps:$4 sm:$0xff]   ;;  %v5142_v21 = vld [vmem:[%s7353_s1 + $0x368] ss:$16 sps:$4 sm:$0xff]  }
  0x79   :  { %1484 = vmatprep.subr.bf16.mxu1 %v5057_v18  ;;  %v5139_v18 = vld [vmem:[%s7353_s1 + $0x5a8] ss:$16 sps:$4 sm:$0xff]  }
  0x7b   :  { %1407 = vmatpush2.bf16.msra.mxu0 %v5058_v23  ;;  %v5150_v23 = vld [vmem:[%s7353_s1 + $0x34c] ss:$16 sps:$4 sm:$0xff]  }
  0x7c   :  { %1485 = vmatpush2.bf16.msra.mxu1 %v5055_v22  ;;  %1408 = vmatprep.subr.bf16.mxu0 %v5066_v25  ;;  %v5147_v22 = vld [vmem:[%s7353_s1 + $0x58c] ss:$16 sps:$4 sm:$0xff]   ;;  %v5148_v25 = vld [vmem:[%s7353_s1 + $0x348] ss:$16 sps:$4 sm:$0xff]  }
  0x7d   :  { %1486 = vmatprep.subr.bf16.mxu1 %v5063_v24  ;;  %v5145_v24 = vld [vmem:[%s7353_s1 + $0x588] ss:$16 sps:$4 sm:$0xff]  }
  0x7f   :  { %1409 = vmatpush2.bf16.msra.mxu0 %v5064_v28  ;;  %v5156_v28 = vld [vmem:[%s7353_s1 + $0x32c] ss:$16 sps:$4 sm:$0xff]  }
  0x80   :  { %1487 = vmatpush2.bf16.msra.mxu1 %v5061_v27  ;;  %1501 = vmatprep.subr.bf16.mxu0 %v5072_v32  ;;  %v5153_v27 = vld [vmem:[%s7353_s1 + $0x56c] ss:$16 sps:$4 sm:$0xff]   ;;  %v5154_v32 = vld [vmem:[%s7353_s1 + $0x328] ss:$16 sps:$4 sm:$0xff]  }
  0x81   :  { %1488 = vmatprep.subr.bf16.mxu1 %v5069_v30  ;;  %v5151_v30 = vld [vmem:[%s7353_s1 + $0x568] ss:$16 sps:$4 sm:$0xff]  }
  0x82   :  { %1411 = vmatmul.mubr.bf16.vlgmr.msra.gmra.mxu0 %v6135_v33 }
  0x83   :  { %1502 = vmatpush1.bf16.msra.mxu0 %v5070_v35  ;;  %1533 = vmatprep.mubr.bf16.mxu0 %v5883_v3  ;;  %v5088_v3 = vld [vmem:[%s7353_s1 + $0x288] ss:$16 sps:$4 sm:$0xff]   ;;  %v5162_v35 = vld [vmem:[%s7353_s1 + $0x30c] ss:$16 sps:$4 sm:$0xff]  }
  0x84   :  { %1489 = vmatpush2.bf16.msra.mxu1 %v5067_v34  ;;  %1503 = vmatprep.subr.bf16.mxu0 %v5078_v13  ;;  %v5159_v34 = vld [vmem:[%s7353_s1 + $0x54c] ss:$16 sps:$4 sm:$0xff]   ;;  %v5160_v13 = vld [vmem:[%s7353_s1 + $0x308] ss:$16 sps:$4 sm:$0xff]  }
  0x85   :  { %1490 = vmatprep.subr.bf16.mxu1 %v5075_v36  ;;  %v5157_v36 = vld [vmem:[%s7353_s1 + $0x548] ss:$16 sps:$4 sm:$0xff]  }
  0x87   :  { %1504 = vmatpush1.bf16.msra.mxu0 %v5076_v38  ;;  %v5172_v38 = vld [vmem:[%s7355_s3 + $0x78] sm:$0xff]  }
  0x88   :  { %1491 = vmatpush2.bf16.msra.mxu1 %v5073_v37  ;;  %1505 = vmatprep.subr.bf16.mxu0 %v5084_v40  ;;  %v5165_v37 = vld [vmem:[%s7353_s1 + $0x52c] ss:$16 sps:$4 sm:$0xff]  }
  0x89   :  { %1542 = vmatprep.subr.bf16.mxu1 %v5081_v39  ;;  %v5163_v39 = vld [vmem:[%s7353_s1 + $0x528] ss:$16 sps:$4 sm:$0xff]  }
  0x8a   :  { %v5173_v40 = vld [vmem:[%s7355_s3 + $0x38] sm:$0xff]  }
  0x8b   :  { %1493 = vmatmul.mubr.bf16.vlgmr.msra.gmra.mxu1 %v5931_v19  ;;  %1506 = vmatpush1.bf16.msra.mxu0 %v5082_v42  ;;  %v5094_v19 = vld [vmem:[%s7353_s1 + $0x268] ss:$16 sps:$4 sm:$0xff]   ;;  %v5174_v42 = vld [vmem:[%s7355_s3 + $0x70] sm:$0xff]  }
  0x8c   :  { %1543 = vmatpush1.bf16.msra.mxu1 %v5079_v41  ;;  %1507 = vmatprep.subr.bf16.mxu0 %v5090_v45  ;;  %v5168_v41 = vld [vmem:[%s7353_s1 + $0x50c] ss:$16 sps:$4 sm:$0xff]   ;;  %v5175_v45 = vld [vmem:[%s7355_s3 + $0x30] sm:$0xff]  }
  0x8d   :  { %1544 = vmatprep.subr.bf16.mxu1 %v5087_v44  ;;  %1574 = vmatprep.mubr.bf16.mxu1 %v5947_v26  ;;  %v5100_v26 = vld [vmem:[%s7353_s1 + $0x248] ss:$16 sps:$4 sm:$0xff]  }
  0x8e   :  { %v5166_v44 = vld [vmem:[%s7353_s1 + $0x508] ss:$16 sps:$4 sm:$0xff]  }
  0x8f   :  { %1508 = vmatpush1.bf16.msra.mxu0 %v5088_v3  ;;  %v5176_v3 = vld [vmem:[%s7355_s3 + $0x68] sm:$0xff]  }
  0x90   :  { %1545 = vmatpush1.bf16.msra.mxu1 %v5085_v46  ;;  %1509 = vmatprep.subr.bf16.mxu0 %v5096_v48  ;;  %v5171_v46 = vld [vmem:[%s7353_s1 + $0x60c] ss:$16 sps:$4 sm:$0xff]   ;;  %v5178_v48 = vld [vmem:[%s7355_s3 + $0x60] sm:$0xff]  }
  0x91   :  { %1546 = vmatprep.subr.bf16.mxu1 %v5093_v47  ;;  %v5169_v47 = vld [vmem:[%s7353_s1 + $0x608] ss:$16 sps:$4 sm:$0xff]  }
  0x93   :  { %1510 = vmatpush1.bf16.msra.mxu0 %v5094_v19  ;;  %v5180_v19 = vld [vmem:[%s7355_s3 + $0x58] sm:$0xff]  }
  0x94   :  { %1547 = vmatpush1.bf16.msra.mxu1 %v5091_v50  ;;  %1511 = vmatprep.subr.bf16.mxu0 %v5102_v52  ;;  %v5179_v50 = vld [vmem:[%s7355_s3 + $0x20] sm:$0xff]   ;;  %v5188_v52 = vld [vmem:[%s7355_s3 + $0xf8] sm:$0xff]  }
  0x95   :  { %1548 = vmatprep.subr.bf16.mxu1 %v5099_v51  ;;  %v5181_v51 = vld [vmem:[%s7355_s3 + $0x18] sm:$0xff]  }
  0x97   :  { %1512 = vmatpush1.bf16.msra.mxu0 %v5100_v26  ;;  %v5190_v26 = vld [vmem:[%s7355_s3 + $0xf0] sm:$0xff]  }
  0x98   :  { %1549 = vmatpush1.bf16.msra.mxu1 %v5097_v53  ;;  %1513 = vmatprep.subr.bf16.mxu0 %v5108_v55  ;;  %v5189_v53 = vld [vmem:[%s7355_s3 + $0xb8] sm:$0xff]   ;;  %v5183_v55 = vld [vmem:[%s7355_s3 + $0x10] sm:$0xff]  }
  0x99   :  { %1550 = vmatprep.subr.bf16.mxu1 %v5105_v54  ;;  %v5191_v54 = vld [vmem:[%s7355_s3 + $0xb0] sm:$0xff]  }
  0x9b   :  { %1514 = vmatpush1.bf16.msra.mxu0 %v5106_v57  ;;  %v5185_v57 = vld [vmem:[%s7355_s3 + $0x8] sm:$0xff]  }
  0x9c   :  { %1551 = vmatpush1.bf16.msra.mxu1 %v5103_v56  ;;  %1515 = vmatprep.subr.bf16.mxu0 %v5114_v59  ;;  %v5184_v56 = vld [vmem:[%s7355_s3 + $0x48] sm:$0xff]  }
  0x9d   :  { %1552 = vmatprep.subr.bf16.mxu1 %v5111_v58  ;;  %v5187_v58 = vld [vmem:[%s7355_s3] sm:$0xff]  }
  0x9f   :  { %1516 = vmatpush1.bf16.msra.mxu0 %v5112_v61  ;;  %v5192_v61 = vld [vmem:[%s7355_s3 + $0xe8] sm:$0xff]  }
  0xa0   :  { %1553 = vmatpush1.bf16.msra.mxu1 %v5109_v60  ;;  %1517 = vmatprep.subr.bf16.mxu0 %v5120_v63 }
  0xa1   :  { %1554 = vmatprep.subr.bf16.mxu1 %v5117_v62  ;;  %v5193_v62 = vld [vmem:[%s7355_s3 + $0xa8] sm:$0xff]  }
  0xa3   :  { %1518 = vmatpush2.bf16.msra.mxu0 %v5118_v1 }
  0xa4   :  { %1555 = vmatpush1.bf16.msra.mxu1 %v5115_v0  ;;  %1519 = vmatprep.subr.bf16.mxu0 %v5126_v4 }
  0xa5   :  { %1556 = vmatprep.subr.bf16.mxu1 %v5123_v2 }
  0xa7   :  { %1520 = vmatpush2.bf16.msra.mxu0 %v5124_v6 }
  0xa8   :  { %1557 = vmatpush1.bf16.msra.mxu1 %v5121_v5  ;;  %1521 = vmatprep.subr.bf16.mxu0 %v5132_v8 }
  0xa9   :  { %1558 = vmatprep.subr.bf16.mxu1 %v5129_v7 }
  0xab   :  { %1522 = vmatpush2.bf16.msra.mxu0 %v5130_v10 }
  0xac   :  { %1559 = vmatpush2.bf16.msra.mxu1 %v5127_v9  ;;  %1523 = vmatprep.subr.bf16.mxu0 %v5138_v12 }
  0xad   :  { %1560 = vmatprep.subr.bf16.mxu1 %v5135_v11 }
  0xaf   :  { %1524 = vmatpush2.bf16.msra.mxu0 %v5136_v15 }
  0xb0   :  { %1561 = vmatpush2.bf16.msra.mxu1 %v5133_v14  ;;  %1525 = vmatprep.subr.bf16.mxu0 %v5144_v17 }
  0xb1   :  { %1562 = vmatprep.subr.bf16.mxu1 %v5141_v16 }
  0xb3   :  { %1526 = vmatpush2.bf16.msra.mxu0 %v5142_v21 }
  0xb4   :  { %1563 = vmatpush2.bf16.msra.mxu1 %v5139_v18  ;;  %1527 = vmatprep.subr.bf16.mxu0 %v5150_v23 }
  0xb5   :  { %1564 = vmatprep.subr.bf16.mxu1 %v5147_v22 }
  0xb7   :  { %1528 = vmatpush2.bf16.msra.mxu0 %v5148_v25 }
  0xb8   :  { %1565 = vmatpush2.bf16.msra.mxu1 %v5145_v24  ;;  %1529 = vmatprep.subr.bf16.mxu0 %v5156_v28 }
  0xb9   :  { %1566 = vmatprep.subr.bf16.mxu1 %v5153_v27 }
  0xbb   :  { %1530 = vmatpush2.bf16.msra.mxu0 %v5154_v32 }
  0xbc   :  { %1567 = vmatpush2.bf16.msra.mxu1 %v5151_v30  ;;  %1531 = vmatprep.subr.bf16.mxu0 %v5162_v35 }
  0xbd   :  { %1568 = vmatprep.subr.bf16.mxu1 %v5159_v34 }
  0xbf   :  { %1532 = vmatpush2.bf16.msra.mxu0 %v5160_v13 }
  0xc0   :  { %1569 = vmatpush2.bf16.msra.mxu1 %v5157_v36  ;;  %4784 = vmatprep.subr.bf16.mxu0 %v5172_v38 }
  0xc1   :  { %1570 = vmatprep.subr.bf16.mxu1 %v5165_v37 }
  0xc2   :  { %1534 = vmatmul.mubr.bf16.vlgmr.msra.gmra.mxu0 %v5933_v20  ;;  %v5177_v20 = vld [vmem:[%s7355_s3 + $0x28] sm:$0xff]  }
  0xc3   :  { %4785 = vmatpush3.bf16.msra.mxu0 %v5173_v40 }
  0xc4   :  { %1571 = vmatpush2.bf16.msra.mxu1 %v5163_v39  ;;  %4786 = vmatprep.subr.bf16.mxu0 %v5174_v42 }
  0xc5   :  { %1572 = vmatprep.subr.bf16.mxu1 %v5168_v41 }
  0xc7   :  { %4787 = vmatpush3.bf16.msra.mxu0 %v5175_v45 }
  0xc8   :  { %1573 = vmatpush2.bf16.msra.mxu1 %v5166_v44  ;;  %4788 = vmatprep.subr.bf16.mxu0 %v5176_v3 }
  0xc9   :  { %1597 = vmatprep.subr.bf16.mxu1 %v5171_v46 }
  0xcb   :  { %1575 = vmatmul.mubr.bf16.vlgmr.msra.gmra.mxu1 %v6135_v33  ;;  %4789 = vmatpush3.bf16.msra.mxu0 %v5177_v20  ;;  %v5182_v33 = vld [vmem:[%s7355_s3 + $0x50] sm:$0xff]  }
  0xcc   :  { %1598 = vmatpush1.bf16.msra.mxu1 %v5169_v47  ;;  %1615 = vmatprep.mubr.bf16.mxu1 %v5641_v29 }
  0xcd   :  { %4790 = vmatprep.subr.bf16.mxu0 %v5178_v48  ;;  %4806 = vmatprep.subr.bf16.mxu1 %v5188_v52 }
  0xcf   :  { %4791 = vmatpush3.bf16.msra.mxu0 %v5179_v50 }
  0xd0   :  { %4792 = vmatprep.subr.bf16.mxu0 %v5180_v19 }
  0xd3   :  { %4478 = vmatmul.mubr.msk.bf16.vlgmr.msra.gmra.mxu1 %vm1292_vm0, %v5960_v31  ;;  %4793 = vmatpush3.bf16.msra.mxu0 %v5181_v51  ;;  %v5186_v31 = vld [vmem:[%s7355_s3 + $0x40] sm:$0xff]  }
  0xd4   :  { %4807 = vmatpush3.bf16.msra.mxu1 %v5189_v53  ;;  %4794 = vmatprep.subr.bf16.mxu0 %v5182_v33 }
  0xd5   :  { %4808 = vmatprep.subr.bf16.mxu1 %v5190_v26 }
  0xd7   :  { %4795 = vmatpush3.bf16.msra.mxu0 %v5183_v55 }
  0xd8   :  { %4809 = vmatpush3.bf16.msra.mxu1 %v5191_v54  ;;  %4796 = vmatprep.subr.bf16.mxu0 %v5184_v56 }
  0xd9   :  { %4810 = vmatprep.subr.bf16.mxu1 %v5192_v61 }
  0xdb   :  { %4797 = vmatpush3.bf16.msra.mxu0 %v5185_v57 }
  0xdc   :  { %4798 = vmatprep.subr.bf16.mxu0 %v5186_v31 }
  0xdf   :  { %4799 = vmatpush3.bf16.msra.mxu0 %v5187_v58 }
 0x102   :  { %v1330_v59 = vpop.f32.mrf.mxu0 }
 0x103   :  { %v1371_v60 = vpop.f32.mrf.mxu1 }
 0x104   :  { %v1332_v63 = vpop.f32.mrf.mxu0 }
 0x105   :  { %v1373_v0 = vpop.f32.mrf.mxu1 }
 0x106   :  { %19 = vsyncpa [#allocation5], 0  ;;  %4811 = vmatpush3.bf16.msra.mxu1 %v5193_v62  ;;  %v5194_v1 = vld [vmem:[%s7355_s3 + $0xe0] sm:$0xff]   ;;  %v1334_v5 = vpop.f32.mrf.mxu0  ;;  %v5196_v9 = vld [vmem:[%s7355_s3 + $0xd8] sm:$0xff]   ;;  %v6447_v23 = vsub.s32 0, %v5826_v43  ;;  %v6453_v25 = vsub.s32 1, %v5826_v43 }
 0x107   :  { %v5195_v2 = vld [vmem:[%s7355_s3 + $0xa0] sm:$0xff]   ;;  %v1375_v4 = vpop.f32.mrf.mxu1  ;;  %4812 = vmatprep.subr.bf16.mxu1 %v5194_v1  ;;  %v5197_v10 = vld [vmem:[%s7355_s3 + $0x98] sm:$0xff]   ;;  %v5198_v14 = vld [vmem:[%s7355_s3 + $0xd0] sm:$0xff]   ;;  %v6459_v33 = vsub.s32 2, %v5826_v43  ;;  %v6462_v53 = vsub.s32 3, %v5826_v43 }
 0x108   :  { %v1335_v7 = vpop.f32.mrf.mxu0  ;;  %v5199_v15 = vld [vmem:[%s7355_s3 + $0x90] sm:$0xff]   ;;  %v5200_v17 = vld [vmem:[%s7355_s3 + $0xc8] sm:$0xff]   ;;  %v5202_v21 = vld [vmem:[%s7355_s3 + $0xc0] sm:$0xff]  }
 0x109   :  { %v1376_v6 = vpop.f32.mrf.mxu1  ;;  %v5201_v18 = vld [vmem:[%s7355_s3 + $0x88] sm:$0xff]   ;;  %v5203_v22 = vld [vmem:[%s7355_s3 + $0x80] sm:$0xff]   ;;  %v5204_v5 = vld [vmem:[%s7357_s5 + $0x70] ss:$8 sps:$4 sm:$0xff]  }
 0x10a   :  { %4813 = vmatpush3.bf16.msra.mxu1 %v5195_v2  ;;  %v290_v24 = vld [vmem:[%s7354_s2] sm:$0xf]  ;;  %v5206_v6 = vld [vmem:[%s7357_s5 + $0x74] ss:$8 sps:$4 sm:$0xff]  }
 0x10b   :  { %v1453_v8 = vpop.f32.mrf.mxu1  ;;  %4814 = vmatprep.subr.bf16.mxu1 %v5196_v9  ;;  %v295_v27 = vrot.slane %v290_v24, %v6447_v23  ;;  %v299_v28 = vrot.slane %v290_v24, %v6453_v25  ;;  %v303_v54 = vrot.slane %v290_v24, %v6459_v33  ;;  %v307_v56 = vrot.slane %v290_v24, %v6462_v53  ;;  %v5218_v24 = vld [vmem:[%s7357_s5 + $0x34] ss:$8 sps:$4 sm:$0xff]  }
 0x10c   :  { %2085 = vmatprep.subr.bf16.mxu0 %v5206_v6  ;;  %v5255_v6 = vld [vmem:[%s7359_s7 + $0x68] ss:$16 sps:$4 sm:$0xff]  }
 0x10d   :  { %v1455_v11 = vpop.f32.mrf.mxu1  ;;  %v1331_v30 = vadd.f32 %v1330_v59, %v295_v27  ;;  %v1333_v32 = vadd.f32 %v1332_v63, %v299_v28  ;;  %v5216_v27 = vld [vmem:[%s7357_s5 + $0x30] ss:$8 sps:$4 sm:$0xff]   ;;  %v5221_v28 = vld [vmem:[%s7357_s5 + $0x24] ss:$8 sps:$4 sm:$0xff]  }
 0x10e   :  { %4815 = vmatpush3.bf16.msra.mxu1 %v5197_v10 }
 0x10f   :  { %v1457_v12 = vpop.f32.mrf.mxu1  ;;  %4816 = vmatprep.subr.bf16.mxu1 %v5198_v14  ;;  %v1372_v34 = vadd.f32 %v1371_v60, %v1331_v30  ;;  %v1374_v36 = vadd.f32 %v1373_v0, %v1333_v32  ;;  %v5219_v30 = vld [vmem:[%s7357_s5 + $0x20] ss:$8 sps:$4 sm:$0xff]   ;;  %v5224_v32 = vld [vmem:[%s7357_s5 + $0x14] ss:$8 sps:$4 sm:$0xff]  }
 0x110   :  { %v5207_v12 = vld [vmem:[%s7357_s5 + $0x60] ss:$8 sps:$4 sm:$0xff]  }
 0x111   :  { %v1458_v16 = vpop.f32.mrf.mxu1 }
 0x112   :  { %4817 = vmatpush3.bf16.msra.mxu1 %v5199_v15  ;;  %v5212_v15 = vld [vmem:[%s7357_s5 + $0x54] ss:$8 sps:$4 sm:$0xff]  }
 0x113   :  { %4818 = vmatprep.subr.bf16.mxu1 %v5200_v17 }
 0x116   :  { %4819 = vmatpush3.bf16.msra.mxu1 %v5201_v18  ;;  %v5210_v18 = vld [vmem:[%s7357_s5 + $0x50] ss:$8 sps:$4 sm:$0xff]  }
 0x117   :  { %4820 = vmatprep.subr.bf16.mxu1 %v5202_v21  ;;  %v5215_v21 = vld [vmem:[%s7357_s5 + $0x44] ss:$8 sps:$4 sm:$0xff]  }
 0x11a   :  { %4821 = vmatpush3.bf16.msra.mxu1 %v5203_v22  ;;  %v5213_v22 = vld [vmem:[%s7357_s5 + $0x40] ss:$8 sps:$4 sm:$0xff]  }
 0x142   :  { %v1412_v35 = vpop.f32.mrf.mxu0 }
 0x143   :  { %v1413_v13 = vadd.f32 %v1412_v35, %v1372_v34  ;;  %v5222_v34 = vld [vmem:[%s7357_s5 + $0x10] ss:$8 sps:$4 sm:$0xff]   ;;  %v5227_v35 = vld [vmem:[%s7357_s5 + $0x4] ss:$8 sps:$4 sm:$0xff]  }
 0x144   :  { %v1414_v37 = vpop.f32.mrf.mxu0 }
 0x145   :  { %v1454_v38 = vadd.f32 %v1453_v8, %v1413_v13  ;;  %v1415_v39 = vadd.f32 %v1414_v37, %v1374_v36  ;;  %v5209_v8 = vld [vmem:[%s7357_s5 + $0x64] ss:$8 sps:$4 sm:$0xff]   ;;  %v5225_v36 = vld [vmem:[%s7357_s5] ss:$8 sps:$4 sm:$0xff]  }
 0x146   :  { %v1416_v40 = vpop.f32.mrf.mxu0  ;;  %v5228_v13 = vld [vmem:[%s7359_s7 + $0xe0] ss:$16 sps:$4 sm:$0xff]   ;;  %v5230_v37 = vld [vmem:[%s7359_s7 + $0xe4] ss:$16 sps:$4 sm:$0xff]  }
 0x147   :  { %v1456_v41 = vadd.f32 %v1455_v11, %v1415_v39  ;;  %v1624_v42 = vmax.f32 %v1454_v38, 0.0  ;;  %v5233_v38 = vld [vmem:[%s7359_s7 + $0xec] ss:$16 sps:$4 sm:$0xff]   ;;  %v5236_v39 = vld [vmem:[%s7359_s7 + $0xc4] ss:$16 sps:$4 sm:$0xff]   ;;  %2343 = vmatprep.subr.bf16.mxu1 %v5230_v37 }
 0x148   :  { %v1417_v44 = vpop.f32.mrf.mxu0  ;;  %v5234_v40 = vld [vmem:[%s7359_s7 + $0xc0] ss:$16 sps:$4 sm:$0xff]   ;;  %v5276_v37 = vld [vmem:[%s7361_s9 + $0x188] ss:$28 sps:$4 sm:$0xff]  }
 0x149   :  { %v1625_v45 = vmax.f32 %v1456_v41, 0.0  ;;  %v1628_v47 = vpack.c.bf16 %v1624_v42, %v1624_v42  ;;  %v5242_v41 = vld [vmem:[%s7359_s7 + $0xa4] ss:$16 sps:$4 sm:$0xff]   ;;  %v5240_v42 = vld [vmem:[%s7359_s7 + $0xa0] ss:$16 sps:$4 sm:$0xff]  }
 0x14a   :  { %v5248_v44 = vld [vmem:[%s7359_s7 + $0x84] ss:$16 sps:$4 sm:$0xff]  }
 0x14b   :  { %v1494_v46 = vpop.f32.mrf.mxu1  ;;  %v1629_v3 = vpack.c.bf16 %v1625_v45, %v1625_v45  ;;  %v5246_v45 = vld [vmem:[%s7359_s7 + $0x80] ss:$16 sps:$4 sm:$0xff]  }
 0x14c   :  { %v1495_v31 = vadd.f32 %v1494_v46, %v303_v54  ;;  %v5254_v46 = vld [vmem:[%s7359_s7 + $0x64] ss:$16 sps:$4 sm:$0xff]  }
 0x14d   :  { %v1496_v20 = vpop.f32.mrf.mxu1  ;;  %1927 = vmatprep.mubr.bf16.mxu0 %v1629_v3  ;;  %v5252_v3 = vld [vmem:[%s7359_s7 + $0x60] ss:$16 sps:$4 sm:$0xff]  }
 0x14e   :  { %1928 = vmatmul.mubr.bf16.vlgmr.msra.gmra.mxu0 %v1628_v47  ;;  %v1497_v59 = vadd.f32 %v1496_v20, %v307_v56  ;;  %v5260_v47 = vld [vmem:[%s7359_s7 + $0x44] ss:$16 sps:$4 sm:$0xff]   ;;  %v5258_v20 = vld [vmem:[%s7359_s7 + $0x40] ss:$16 sps:$4 sm:$0xff]  }
 0x14f   :  { %v1498_v48 = vpop.f32.mrf.mxu1  ;;  %2117 = vmatprep.mubr.bf16.mxu0 %v5641_v29  ;;  %2086 = vmatpush1.bf16.msra.mxu0 %v5204_v5  ;;  %v5257_v5 = vld [vmem:[%s7359_s7 + $0x6c] ss:$16 sps:$4 sm:$0xff]  }
 0x150   :  { %2087 = vmatprep.subr.bf16.mxu0 %v5209_v8  ;;  %v5261_v8 = vld [vmem:[%s7359_s7 + $0x48] ss:$16 sps:$4 sm:$0xff]  }
 0x151   :  { %v1499_v50 = vpop.f32.mrf.mxu1 }
 0x153   :  { %2088 = vmatpush1.bf16.msra.mxu0 %v5207_v12  ;;  %v5267_v12 = vld [vmem:[%s7359_s7 + $0x28] ss:$16 sps:$4 sm:$0xff]  }
 0x154   :  { %2089 = vmatprep.subr.bf16.mxu0 %v5212_v15  ;;  %v5275_v15 = vld [vmem:[%s7359_s7 + $0xc] ss:$16 sps:$4 sm:$0xff]  }
 0x157   :  { %2090 = vmatpush1.bf16.msra.mxu0 %v5210_v18  ;;  %v5278_v18 = vld [vmem:[%s7361_s9 + $0x18c] ss:$28 sps:$4 sm:$0xff]  }
 0x158   :  { %2091 = vmatprep.subr.bf16.mxu0 %v5215_v21  ;;  %v5281_v21 = vld [vmem:[%s7361_s9 + $0x50c] ss:$28 sps:$4 sm:$0xff]  }
 0x15b   :  { %2092 = vmatpush1.bf16.msra.mxu0 %v5213_v22  ;;  %v1993_v22 = vld [vmem:[%s7358_s6] sm:$0x3] }
 0x15c   :  { %2093 = vmatprep.subr.bf16.mxu0 %v5218_v24  ;;  %v1998_v24 = vrot.slane %v1993_v22, %v6447_v23 }
 0x15f   :  { %2094 = vmatpush1.bf16.msra.mxu0 %v5216_v27  ;;  %v2002_v27 = vrot.slane %v1993_v22, %v6453_v25  ;;  %v5353_v22 = vld [vmem:[%s7361_s9 + $0x5ec] ss:$28 sps:$4 sm:$0xff]  }
 0x160   :  { %2095 = vmatprep.subr.bf16.mxu0 %v5221_v28 }
 0x163   :  { %2096 = vmatpush1.bf16.msra.mxu0 %v5219_v30 }
 0x164   :  { %2097 = vmatprep.subr.bf16.mxu0 %v5224_v32 }
 0x167   :  { %2098 = vmatpush1.bf16.msra.mxu0 %v5222_v34 }
 0x168   :  { %2099 = vmatprep.subr.bf16.mxu0 %v5227_v35 }
 0x16b   :  { %2100 = vmatpush1.bf16.msra.mxu0 %v5225_v36 }
 0x16c   :  { %2384 = vmatprep.subr.bf16.mxu0 %v5233_v38  ;;  %v5279_v38 = vld [vmem:[%s7361_s9 + $0x508] ss:$28 sps:$4 sm:$0xff]  }
 0x182   :  { %v1535_v19 = vpop.f32.mrf.mxu0 }
 0x183   :  { %v1536_v60 = vadd.f32 %v1535_v19, %v1495_v31 }
 0x184   :  { %v1537_v51 = vpop.f32.mrf.mxu0 }
 0x185   :  { %v1538_v62 = vadd.f32 %v1537_v51, %v1497_v59 }
 0x186   :  { %v1539_v52 = vpop.f32.mrf.mxu0 }
 0x188   :  { %v1540_v26 = vpop.f32.mrf.mxu0 }
 0x189   :  { %v4479_v26 = vld [vmem:[%s7356_s4] ss:$0 sm:$0xff] }
 0x18b   :  { %v1576_v55 = vpop.f32.mrf.mxu1 }
 0x18c   :  { %v1577_v63 = vadd.f32 %v1576_v55, %v1536_v60 }
 0x18d   :  { %v1578_v57 = vpop.f32.mrf.mxu1 }
 0x18e   :  { %v1579_v1 = vadd.f32 %v1578_v57, %v1538_v62 }
 0x18f   :  { %v1580_v58 = vpop.f32.mrf.mxu1 }
 0x191   :  { %v1581_v61 = vpop.f32.mrf.mxu1 }
 0x192   :  { %v5231_v61 = vld [vmem:[%s7359_s7 + $0xe8] ss:$16 sps:$4 sm:$0xff]  }
 0x193   :  { %v1617_v0 = vpop.f32.mrf.mxu1 }
 0x194   :  { %v1618_v2 = vadd.f32 %v1617_v0, %v1577_v63  ;;  %v5239_v63 = vld [vmem:[%s7359_s7 + $0xcc] ss:$16 sps:$4 sm:$0xff]   ;;  %v5237_v0 = vld [vmem:[%s7359_s7 + $0xc8] ss:$16 sps:$4 sm:$0xff]  }
 0x195   :  { %v1619_v4 = vpop.f32.mrf.mxu1 }
 0x196   :  { %v1620_v7 = vadd.f32 %v1619_v4, %v1579_v1  ;;  %v1626_v9 = vmax.f32 %v1618_v2, 0.0  ;;  %v5245_v1 = vld [vmem:[%s7359_s7 + $0xac] ss:$16 sps:$4 sm:$0xff]   ;;  %v5243_v2 = vld [vmem:[%s7359_s7 + $0xa8] ss:$16 sps:$4 sm:$0xff]  }
 0x197   :  { %v1621_v10 = vpop.f32.mrf.mxu1  ;;  %v5251_v4 = vld [vmem:[%s7359_s7 + $0x8c] ss:$16 sps:$4 sm:$0xff]  }
 0x198   :  { %v1627_v11 = vmax.f32 %v1620_v7, 0.0  ;;  %v1630_v17 = vpack.c.bf16 %v1626_v9, %v1626_v9  ;;  %v5263_v7 = vld [vmem:[%s7359_s7 + $0x4c] ss:$16 sps:$4 sm:$0xff]   ;;  %v5266_v9 = vld [vmem:[%s7359_s7 + $0x24] ss:$16 sps:$4 sm:$0xff]  }
 0x199   :  { %v1622_v14 = vpop.f32.mrf.mxu1  ;;  %v5269_v10 = vld [vmem:[%s7359_s7 + $0x2c] ss:$16 sps:$4 sm:$0xff]  }
 0x19a   :  { %v1631_v16 = vpack.c.bf16 %v1627_v11, %v1627_v11  ;;  %v5264_v11 = vld [vmem:[%s7359_s7 + $0x20] ss:$16 sps:$4 sm:$0xff]   ;;  %v5272_v14 = vld [vmem:[%s7359_s7 + $0x4] ss:$16 sps:$4 sm:$0xff]  }
 0x19c   :  { %1967 = vmatprep.mubr.bf16.mxu1 %v1631_v16  ;;  %v5270_v16 = vld [vmem:[%s7359_s7] ss:$16 sps:$4 sm:$0xff]  }
 0x19d   :  { %1968 = vmatmul.mubr.bf16.vlgmr.msra.gmra.mxu1 %v1630_v17  ;;  %v5273_v17 = vld [vmem:[%s7359_s7 + $0x8] ss:$16 sps:$4 sm:$0xff]  }
 0x19e   :  { %2375 = vmatprep.mubr.bf16.mxu1 %v5641_v29  ;;  %2344 = vmatpush1.bf16.msra.mxu1 %v5228_v13 }
 0x19f   :  { %2345 = vmatprep.subr.bf16.mxu1 %v5236_v39 }
 0x1a2   :  { %2346 = vmatpush1.bf16.msra.mxu1 %v5234_v40  ;;  %v5284_v40 = vld [vmem:[%s7361_s9 + $0x154] ss:$28 sps:$4 sm:$0xff]  }
 0x1a3   :  { %2347 = vmatprep.subr.bf16.mxu1 %v5242_v41  ;;  %v5287_v41 = vld [vmem:[%s7361_s9 + $0x4d4] ss:$28 sps:$4 sm:$0xff]  }
 0x1a6   :  { %2348 = vmatpush1.bf16.msra.mxu1 %v5240_v42  ;;  %v5282_v42 = vld [vmem:[%s7361_s9 + $0x150] ss:$28 sps:$4 sm:$0xff]  }
 0x1a7   :  { %2349 = vmatprep.subr.bf16.mxu1 %v5248_v44  ;;  %v5285_v44 = vld [vmem:[%s7361_s9 + $0x4d0] ss:$28 sps:$4 sm:$0xff]  }
 0x1aa   :  { %2350 = vmatpush1.bf16.msra.mxu1 %v5246_v45  ;;  %v5290_v45 = vld [vmem:[%s7361_s9 + $0x11c] ss:$28 sps:$4 sm:$0xff]  }
 0x1ab   :  { %2351 = vmatprep.subr.bf16.mxu1 %v5254_v46  ;;  %v5293_v46 = vld [vmem:[%s7361_s9 + $0x49c] ss:$28 sps:$4 sm:$0xff]  }
 0x1ae   :  { %2352 = vmatpush1.bf16.msra.mxu1 %v5252_v3  ;;  %v5288_v3 = vld [vmem:[%s7361_s9 + $0x118] ss:$28 sps:$4 sm:$0xff]  }
 0x1af   :  { %2353 = vmatprep.subr.bf16.mxu1 %v5260_v47  ;;  %v5291_v47 = vld [vmem:[%s7361_s9 + $0x498] ss:$28 sps:$4 sm:$0xff]  }
 0x1b2   :  { %2354 = vmatpush1.bf16.msra.mxu1 %v5258_v20  ;;  %v5296_v20 = vld [vmem:[%s7361_s9 + $0xe4] ss:$28 sps:$4 sm:$0xff]  }
 0x1b3   :  { %2355 = vmatprep.subr.bf16.mxu1 %v5266_v9  ;;  %v5333_v9 = vld [vmem:[%s7361_s9 + $0x690] ss:$28 sps:$4 sm:$0xff]  }
 0x1b6   :  { %2356 = vmatpush1.bf16.msra.mxu1 %v5264_v11  ;;  %v5341_v11 = vld [vmem:[%s7361_s9 + $0x65c] ss:$28 sps:$4 sm:$0xff]  }
 0x1b7   :  { %2357 = vmatprep.subr.bf16.mxu1 %v5272_v14  ;;  %v5339_v14 = vld [vmem:[%s7361_s9 + $0x658] ss:$28 sps:$4 sm:$0xff]  }
 0x1ba   :  { %2358 = vmatpush1.bf16.msra.mxu1 %v5270_v16  ;;  %v5347_v16 = vld [vmem:[%s7361_s9 + $0x624] ss:$28 sps:$4 sm:$0xff]  }
 0x1bb   :  { %3878 = vmatprep.subr.bf16.mxu1 %v5278_v18  ;;  %v5345_v18 = vld [vmem:[%s7361_s9 + $0x620] ss:$28 sps:$4 sm:$0xff]  }
 0x20e   :  { %v4800_v48 = vpop.f32.mrf.mxu0 }
 0x210   :  { %v4801_v50 = vpop.f32.mrf.mxu0 }
 0x211   :  { %v4802_v19 = vadd.f32 %v4801_v50, %v4800_v48  ;;  %v5299_v48 = vld [vmem:[%s7361_s9 + $0x464] ss:$28 sps:$4 sm:$0xff]  }
 0x212   :  { %v4803_v51 = vpop.f32.mrf.mxu0  ;;  %v5294_v50 = vld [vmem:[%s7361_s9 + $0xe0] ss:$28 sps:$4 sm:$0xff]  }
 0x213   :  { %v1930_v56 = vadd.f32 %v4802_v19, %v4479_v26  ;;  %v5297_v19 = vld [vmem:[%s7361_s9 + $0x460] ss:$28 sps:$4 sm:$0xff]   ;;  %v5302_v51 = vld [vmem:[%s7361_s9 + $0xac] ss:$28 sps:$4 sm:$0xff]  }
 0x214   :  { %v4804_v52 = vpop.f32.mrf.mxu0  ;;  %v5300_v26 = vld [vmem:[%s7361_s9 + $0xa8] ss:$28 sps:$4 sm:$0xff]  }
 0x215   :  { %v5305_v52 = vld [vmem:[%s7361_s9 + $0x42c] ss:$28 sps:$4 sm:$0xff]  }
 0x25d   :  { %v4822_v54 = vpop.f32.mrf.mxu1 }
 0x25f   :  { %v4823_v55 = vpop.f32.mrf.mxu1 }
 0x260   :  { %v4824_v57 = vadd.f32 %v4823_v55, %v4822_v54  ;;  %v5303_v54 = vld [vmem:[%s7361_s9 + $0x428] ss:$28 sps:$4 sm:$0xff]   ;;  %v5308_v55 = vld [vmem:[%s7361_s9 + $0x74] ss:$28 sps:$4 sm:$0xff]  }
 0x261   :  { %v4825_v31 = vpop.f32.mrf.mxu1 }
 0x262   :  { %v1970_v58 = vadd.f32 %v4824_v57, %v1930_v56  ;;  %v5311_v56 = vld [vmem:[%s7361_s9 + $0x3f4] ss:$28 sps:$4 sm:$0xff]  }
 0x263   :  { %v4826_v59 = vpop.f32.mrf.mxu1  ;;  %v5306_v57 = vld [vmem:[%s7361_s9 + $0x70] ss:$28 sps:$4 sm:$0xff]  }
 0x264   :  { %v1975_v60 = vmax.f32 %v1970_v58, 0.0  ;;  %v5309_v31 = vld [vmem:[%s7361_s9 + $0x3f0] ss:$28 sps:$4 sm:$0xff]   ;;  %v5314_v58 = vld [vmem:[%s7361_s9 + $0x3c] ss:$28 sps:$4 sm:$0xff]  }
 0x265   :  { %v5317_v59 = vld [vmem:[%s7361_s9 + $0x3bc] ss:$28 sps:$4 sm:$0xff]  }
 0x266   :  { %v1976_v62 = vpack.c.bf16 %v1975_v60, %v1975_v60  ;;  %v5312_v60 = vld [vmem:[%s7361_s9 + $0x38] ss:$28 sps:$4 sm:$0xff]  }
 0x268   :  { %2118 = vmatmul.mubr.bf16.vlgmr.msra.gmra.mxu0 %v1976_v62  ;;  %v5320_v62 = vld [vmem:[%s7361_s9 + $0x4] ss:$28 sps:$4 sm:$0xff]  }
 0x269   :  { %2385 = vmatpush1.bf16.msra.mxu0 %v5231_v61  ;;  %2416 = vmatprep.mubr.bf16.mxu0 %v5641_v29  ;;  %v5249_v29 = vld [vmem:[%s7359_s7 + $0x88] ss:$16 sps:$4 sm:$0xff]  }
 0x26a   :  { %2386 = vmatprep.subr.bf16.mxu0 %v5239_v63  ;;  %v5315_v61 = vld [vmem:[%s7361_s9 + $0x3b8] ss:$28 sps:$4 sm:$0xff]   ;;  %v5323_v63 = vld [vmem:[%s7361_s9 + $0x384] ss:$28 sps:$4 sm:$0xff]  }
 0x26d   :  { %2387 = vmatpush1.bf16.msra.mxu0 %v5237_v0  ;;  %v5318_v0 = vld [vmem:[%s7361_s9] ss:$28 sps:$4 sm:$0xff]  }
 0x26e   :  { %2388 = vmatprep.subr.bf16.mxu0 %v5245_v1  ;;  %v5321_v1 = vld [vmem:[%s7361_s9 + $0x380] ss:$28 sps:$4 sm:$0xff]  }
 0x271   :  { %2389 = vmatpush1.bf16.msra.mxu0 %v5243_v2  ;;  %v5326_v2 = vld [vmem:[%s7361_s9 + $0x34c] ss:$28 sps:$4 sm:$0xff]  }
 0x272   :  { %2390 = vmatprep.subr.bf16.mxu0 %v5251_v4  ;;  %v5329_v4 = vld [vmem:[%s7361_s9 + $0x6cc] ss:$28 sps:$4 sm:$0xff]  }
 0x275   :  { %2391 = vmatpush1.bf16.msra.mxu0 %v5249_v29  ;;  %v5324_v29 = vld [vmem:[%s7361_s9 + $0x348] ss:$28 sps:$4 sm:$0xff]  }
 0x276   :  { %2392 = vmatprep.subr.bf16.mxu0 %v5257_v5  ;;  %v5327_v5 = vld [vmem:[%s7361_s9 + $0x6c8] ss:$28 sps:$4 sm:$0xff]  }
 0x279   :  { %2393 = vmatpush1.bf16.msra.mxu0 %v5255_v6  ;;  %v5332_v6 = vld [vmem:[%s7361_s9 + $0x314] ss:$28 sps:$4 sm:$0xff]  }
 0x27a   :  { %2394 = vmatprep.subr.bf16.mxu0 %v5263_v7  ;;  %v5335_v7 = vld [vmem:[%s7361_s9 + $0x694] ss:$28 sps:$4 sm:$0xff]  }
 0x27d   :  { %2395 = vmatpush1.bf16.msra.mxu0 %v5261_v8  ;;  %v5330_v8 = vld [vmem:[%s7361_s9 + $0x310] ss:$28 sps:$4 sm:$0xff]  }
 0x27e   :  { %2396 = vmatprep.subr.bf16.mxu0 %v5269_v10  ;;  %v5338_v10 = vld [vmem:[%s7361_s9 + $0x2dc] ss:$28 sps:$4 sm:$0xff]  }
 0x281   :  { %2397 = vmatpush1.bf16.msra.mxu0 %v5267_v12  ;;  %v5336_v12 = vld [vmem:[%s7361_s9 + $0x2d8] ss:$28 sps:$4 sm:$0xff]  }
 0x282   :  { %2398 = vmatprep.subr.bf16.mxu0 %v5275_v15  ;;  %v5344_v15 = vld [vmem:[%s7361_s9 + $0x2a4] ss:$28 sps:$4 sm:$0xff]  }
 0x285   :  { %2399 = vmatpush1.bf16.msra.mxu0 %v5273_v17  ;;  %v5342_v17 = vld [vmem:[%s7361_s9 + $0x2a0] ss:$28 sps:$4 sm:$0xff]  }
 0x286   :  { %3919 = vmatprep.subr.bf16.mxu0 %v5281_v21  ;;  %v5350_v21 = vld [vmem:[%s7361_s9 + $0x26c] ss:$28 sps:$4 sm:$0xff]  }
 0x328   :  { %v2119_v28 = vpop.f32.mrf.mxu0 }
 0x329   :  { %v2120_v30 = vadd.f32 %v2119_v28, %v1998_v24  ;;  %v5348_v24 = vld [vmem:[%s7361_s9 + $0x268] ss:$28 sps:$4 sm:$0xff]   ;;  %v5356_v28 = vld [vmem:[%s7361_s9 + $0x234] ss:$28 sps:$4 sm:$0xff]  }
 0x32a   :  { %v2121_v32 = vpop.f32.mrf.mxu0 }
 0x32b   :  { %2126 = vst [vmem:[#allocation4] sm:$0x3] %v2120_v30  ;;  %v2122_v34 = vadd.f32 %v2121_v32, %v2002_v27  ;;  %v5351_v27 = vld [vmem:[%s7361_s9 + $0x5e8] ss:$28 sps:$4 sm:$0xff]   ;;  %v5359_v30 = vld [vmem:[%s7361_s9 + $0x5b4] ss:$28 sps:$4 sm:$0xff]  }
 0x32c   :  { %v2123_v35 = vpop.f32.mrf.mxu0  ;;  %v5354_v32 = vld [vmem:[%s7361_s9 + $0x230] ss:$28 sps:$4 sm:$0xff]  }
 0x32d   :  { %v2127_v36 = vmax.f32 %v2122_v34, 0.0  ;;  %v5357_v34 = vld [vmem:[%s7361_s9 + $0x5b0] ss:$28 sps:$4 sm:$0xff]   ;;  %v5362_v35 = vld [vmem:[%s7361_s9 + $0x1fc] ss:$28 sps:$4 sm:$0xff]  }
 0x32e   :  { %v2124_v13 = vpop.f32.mrf.mxu0 }
 0x32f   :  { %v2128_v39 = vpack.c.bf16 %v2127_v36, %v2127_v36  ;;  %v5365_v36 = vld [vmem:[%s7361_s9 + $0x57c] ss:$28 sps:$4 sm:$0xff]  }
 0x330   :  { %v5360_v13 = vld [vmem:[%s7361_s9 + $0x1f8] ss:$28 sps:$4 sm:$0xff]  }
 0x331   :  { %2376 = vmatmul.mubr.bf16.vlgmr.msra.gmra.mxu1 %v2128_v39  ;;  %2417 = vmatmul.mubr.bf16.vlgmr.msra.gmra.mxu0 %v2128_v39  ;;  %v5371_v39 = vld [vmem:[%s7361_s9 + $0x544] ss:$28 sps:$4 sm:$0xff]  }
 0x332   :  { %3879 = vmatpush1.bf16.msra.mxu1 %v5276_v37  ;;  %3920 = vmatpush1.bf16.msra.mxu0 %v5279_v38  ;;  %v5363_v37 = vld [vmem:[%s7361_s9 + $0x578] ss:$28 sps:$4 sm:$0xff]   ;;  %v5368_v38 = vld [vmem:[%s7361_s9 + $0x1c4] ss:$28 sps:$4 sm:$0xff]  }
 0x333   :  { %3880 = vmatprep.subr.bf16.mxu1 %v5284_v40  ;;  %3921 = vmatprep.subr.bf16.mxu0 %v5287_v41  ;;  %v5366_v40 = vld [vmem:[%s7361_s9 + $0x1c0] ss:$28 sps:$4 sm:$0xff]  }
 0x334   :  { %v5369_v41 = vld [vmem:[%s7361_s9 + $0x540] ss:$28 sps:$4 sm:$0xff]  }
 0x336   :  { %3881 = vmatpush1.bf16.msra.mxu1 %v5282_v42  ;;  %3922 = vmatpush1.bf16.msra.mxu0 %v5285_v44  ;;  %v5374_v42 = vld [vmem:[%s7361_s9 + $0x194] ss:$28 sps:$4 sm:$0xff]  }
 0x337   :  { %3882 = vmatprep.subr.bf16.mxu1 %v5290_v45  ;;  %3923 = vmatprep.subr.bf16.mxu0 %v5293_v46  ;;  %v5377_v44 = vld [vmem:[%s7361_s9 + $0x514] ss:$28 sps:$4 sm:$0xff]   ;;  %v2161_v45 = vld [vmem:[%s7360_s8] sm:$0xf] }
 0x338   :  { %v2166_v46 = vrot.slane %v2161_v45, %v6447_v23 }
 0x33a   :  { %3883 = vmatpush1.bf16.msra.mxu1 %v5288_v3  ;;  %3924 = vmatpush1.bf16.msra.mxu0 %v5291_v47  ;;  %v2174_v3 = vrot.slane %v2161_v45, %v6459_v33  ;;  %v2170_v47 = vrot.slane %v2161_v45, %v6453_v25 }
 0x33b   :  { %3884 = vmatprep.subr.bf16.mxu1 %v5296_v20  ;;  %3925 = vmatprep.subr.bf16.mxu0 %v5299_v48  ;;  %v2178_v20 = vrot.slane %v2161_v45, %v6462_v53  ;;  %v5423_v45 = vld [vmem:[%s7361_s9 + $0x6d0] ss:$28 sps:$4 sm:$0xff]  }
 0x33e   :  { %3885 = vmatpush1.bf16.msra.mxu1 %v5294_v50  ;;  %3926 = vmatpush1.bf16.msra.mxu0 %v5297_v19 }
 0x33f   :  { %3886 = vmatprep.subr.bf16.mxu1 %v5302_v51  ;;  %3927 = vmatprep.subr.bf16.mxu0 %v5305_v52 }
 0x342   :  { %3887 = vmatpush1.bf16.msra.mxu1 %v5300_v26  ;;  %3928 = vmatpush1.bf16.msra.mxu0 %v5303_v54 }
 0x343   :  { %3888 = vmatprep.subr.bf16.mxu1 %v5308_v55  ;;  %3929 = vmatprep.subr.bf16.mxu0 %v5311_v56 }
 0x346   :  { %3889 = vmatpush1.bf16.msra.mxu1 %v5306_v57  ;;  %3930 = vmatpush1.bf16.msra.mxu0 %v5309_v31 }
 0x347   :  { %3890 = vmatprep.subr.bf16.mxu1 %v5314_v58  ;;  %3931 = vmatprep.subr.bf16.mxu0 %v5317_v59 }
 0x34a   :  { %3891 = vmatpush1.bf16.msra.mxu1 %v5312_v60  ;;  %3932 = vmatpush1.bf16.msra.mxu0 %v5315_v61 }
 0x34b   :  { %3892 = vmatprep.subr.bf16.mxu1 %v5320_v62  ;;  %3933 = vmatprep.subr.bf16.mxu0 %v5323_v63 }
 0x34e   :  { %3893 = vmatpush1.bf16.msra.mxu1 %v5318_v0  ;;  %3934 = vmatpush1.bf16.msra.mxu0 %v5321_v1  ;;  %v5372_v1 = vld [vmem:[%s7361_s9 + $0x190] ss:$28 sps:$4 sm:$0xff]  }
 0x34f   :  { %3894 = vmatprep.subr.bf16.mxu1 %v5326_v2  ;;  %3935 = vmatprep.subr.bf16.mxu0 %v5329_v4  ;;  %v5375_v2 = vld [vmem:[%s7361_s9 + $0x510] ss:$28 sps:$4 sm:$0xff]  }
 0x352   :  { %3895 = vmatpush2.bf16.msra.mxu1 %v5324_v29  ;;  %3936 = vmatpush2.bf16.msra.mxu0 %v5327_v5  ;;  %v5380_v5 = vld [vmem:[%s7361_s9 + $0x15c] ss:$28 sps:$4 sm:$0xff]  }
 0x353   :  { %3896 = vmatprep.subr.bf16.mxu1 %v5332_v6  ;;  %3937 = vmatprep.subr.bf16.mxu0 %v5335_v7  ;;  %v5383_v6 = vld [vmem:[%s7361_s9 + $0x4dc] ss:$28 sps:$4 sm:$0xff]  }
 0x354   :  { %v5378_v7 = vld [vmem:[%s7361_s9 + $0x158] ss:$28 sps:$4 sm:$0xff]  }
 0x356   :  { %3897 = vmatpush2.bf16.msra.mxu1 %v5330_v8  ;;  %3938 = vmatpush2.bf16.msra.mxu0 %v5333_v9  ;;  %v5381_v8 = vld [vmem:[%s7361_s9 + $0x4d8] ss:$28 sps:$4 sm:$0xff]   ;;  %v5386_v9 = vld [vmem:[%s7361_s9 + $0x124] ss:$28 sps:$4 sm:$0xff]  }
 0x357   :  { %3898 = vmatprep.subr.bf16.mxu1 %v5338_v10  ;;  %3939 = vmatprep.subr.bf16.mxu0 %v5341_v11  ;;  %v5389_v10 = vld [vmem:[%s7361_s9 + $0x4a4] ss:$28 sps:$4 sm:$0xff]  }
 0x358   :  { %v5384_v11 = vld [vmem:[%s7361_s9 + $0x120] ss:$28 sps:$4 sm:$0xff]  }
 0x35a   :  { %3899 = vmatpush2.bf16.msra.mxu1 %v5336_v12  ;;  %3940 = vmatpush2.bf16.msra.mxu0 %v5339_v14  ;;  %v5387_v12 = vld [vmem:[%s7361_s9 + $0x4a0] ss:$28 sps:$4 sm:$0xff]   ;;  %v5392_v14 = vld [vmem:[%s7361_s9 + $0xec] ss:$28 sps:$4 sm:$0xff]  }
 0x35b   :  { %3900 = vmatprep.subr.bf16.mxu1 %v5344_v15  ;;  %3941 = vmatprep.subr.bf16.mxu0 %v5347_v16  ;;  %v5395_v15 = vld [vmem:[%s7361_s9 + $0x46c] ss:$28 sps:$4 sm:$0xff]  }
 0x35c   :  { %v5390_v16 = vld [vmem:[%s7361_s9 + $0xe8] ss:$28 sps:$4 sm:$0xff]  }
 0x35e   :  { %3901 = vmatpush2.bf16.msra.mxu1 %v5342_v17  ;;  %3942 = vmatpush2.bf16.msra.mxu0 %v5345_v18  ;;  %v5393_v17 = vld [vmem:[%s7361_s9 + $0x468] ss:$28 sps:$4 sm:$0xff]   ;;  %v5398_v18 = vld [vmem:[%s7361_s9 + $0xb4] ss:$28 sps:$4 sm:$0xff]  }
 0x35f   :  { %3902 = vmatprep.subr.bf16.mxu1 %v5350_v21  ;;  %3943 = vmatprep.subr.bf16.mxu0 %v5353_v22  ;;  %v5401_v21 = vld [vmem:[%s7361_s9 + $0x434] ss:$28 sps:$4 sm:$0xff]  }
 0x360   :  { %v5396_v22 = vld [vmem:[%s7361_s9 + $0xb0] ss:$28 sps:$4 sm:$0xff]  }
 0x362   :  { %3903 = vmatpush2.bf16.msra.mxu1 %v5348_v24  ;;  %3944 = vmatpush2.bf16.msra.mxu0 %v5351_v27  ;;  %v5399_v24 = vld [vmem:[%s7361_s9 + $0x430] ss:$28 sps:$4 sm:$0xff]   ;;  %v5404_v27 = vld [vmem:[%s7361_s9 + $0x7c] ss:$28 sps:$4 sm:$0xff]  }
 0x363   :  { %3904 = vmatprep.subr.bf16.mxu1 %v5356_v28  ;;  %3945 = vmatprep.subr.bf16.mxu0 %v5359_v30  ;;  %v5407_v28 = vld [vmem:[%s7361_s9 + $0x3fc] ss:$28 sps:$4 sm:$0xff]  }
 0x364   :  { %v5402_v30 = vld [vmem:[%s7361_s9 + $0x78] ss:$28 sps:$4 sm:$0xff]  }
 0x366   :  { %3905 = vmatpush2.bf16.msra.mxu1 %v5354_v32  ;;  %3946 = vmatpush2.bf16.msra.mxu0 %v5357_v34  ;;  %v5405_v32 = vld [vmem:[%s7361_s9 + $0x3f8] ss:$28 sps:$4 sm:$0xff]   ;;  %v5410_v34 = vld [vmem:[%s7361_s9 + $0x44] ss:$28 sps:$4 sm:$0xff]  }
 0x367   :  { %3906 = vmatprep.subr.bf16.mxu1 %v5362_v35  ;;  %3947 = vmatprep.subr.bf16.mxu0 %v5365_v36  ;;  %v5413_v35 = vld [vmem:[%s7361_s9 + $0x3c4] ss:$28 sps:$4 sm:$0xff]  }
 0x368   :  { %v5408_v36 = vld [vmem:[%s7361_s9 + $0x40] ss:$28 sps:$4 sm:$0xff]  }
 0x36a   :  { %3907 = vmatpush2.bf16.msra.mxu1 %v5360_v13  ;;  %3948 = vmatpush2.bf16.msra.mxu0 %v5363_v37  ;;  %v5411_v13 = vld [vmem:[%s7361_s9 + $0x3c0] ss:$28 sps:$4 sm:$0xff]   ;;  %v5416_v37 = vld [vmem:[%s7361_s9 + $0xc] ss:$28 sps:$4 sm:$0xff]  }
 0x36b   :  { %3908 = vmatprep.subr.bf16.mxu1 %v5368_v38  ;;  %3949 = vmatprep.subr.bf16.mxu0 %v5371_v39  ;;  %v5419_v38 = vld [vmem:[%s7361_s9 + $0x38c] ss:$28 sps:$4 sm:$0xff]  }
 0x36c   :  { %v5414_v39 = vld [vmem:[%s7361_s9 + $0x8] ss:$28 sps:$4 sm:$0xff]  }
 0x36e   :  { %3909 = vmatpush2.bf16.msra.mxu1 %v5366_v40  ;;  %3950 = vmatpush2.bf16.msra.mxu0 %v5369_v41  ;;  %v5417_v40 = vld [vmem:[%s7361_s9 + $0x388] ss:$28 sps:$4 sm:$0xff]   ;;  %v5422_v41 = vld [vmem:[%s7361_s9 + $0x354] ss:$28 sps:$4 sm:$0xff]  }
 0x36f   :  { %3960 = vmatprep.subr.bf16.mxu1 %v5374_v42  ;;  %4001 = vmatprep.subr.bf16.mxu0 %v5377_v44  ;;  %v5425_v42 = vld [vmem:[%s7361_s9 + $0x6d4] ss:$28 sps:$4 sm:$0xff]  }
 0x370   :  { %v5420_v44 = vld [vmem:[%s7361_s9 + $0x350] ss:$28 sps:$4 sm:$0xff]  }
 0x3f1   :  { %v2377_v48 = vpop.f32.mrf.mxu1  ;;  %v2418_v50 = vpop.f32.mrf.mxu0 }
 0x3f2   :  { %v2378_v19 = vadd.f32 %v2377_v48, %v2166_v46  ;;  %v2419_v51 = vadd.f32 %v2418_v50, %v2174_v3  ;;  %v5428_v46 = vld [vmem:[%s7361_s9 + $0x31c] ss:$28 sps:$4 sm:$0xff]   ;;  %v5434_v48 = vld [vmem:[%s7361_s9 + $0x2e4] ss:$28 sps:$4 sm:$0xff]  }
 0x3f3   :  { %v2379_v52 = vpop.f32.mrf.mxu1  ;;  %v2420_v26 = vpop.f32.mrf.mxu0  ;;  %v5431_v3 = vld [vmem:[%s7361_s9 + $0x69c] ss:$28 sps:$4 sm:$0xff]   ;;  %v5437_v50 = vld [vmem:[%s7361_s9 + $0x664] ss:$28 sps:$4 sm:$0xff]  }
 0x3f4   :  { %v2380_v54 = vadd.f32 %v2379_v52, %v2170_v47  ;;  %v2421_v55 = vadd.f32 %v2420_v26, %v2178_v20  ;;  %v2425_v56 = vmax.f32 %v2378_v19, 0.0  ;;  %v2427_v57 = vmax.f32 %v2419_v51, 0.0  ;;  %v5426_v47 = vld [vmem:[%s7361_s9 + $0x318] ss:$28 sps:$4 sm:$0xff]   ;;  %v5432_v19 = vld [vmem:[%s7361_s9 + $0x2e0] ss:$28 sps:$4 sm:$0xff]  }
 0x3f5   :  { %v2381_v31 = vpop.f32.mrf.mxu1  ;;  %v2422_v58 = vpop.f32.mrf.mxu0  ;;  %v5429_v20 = vld [vmem:[%s7361_s9 + $0x698] ss:$28 sps:$4 sm:$0xff]   ;;  %v5435_v51 = vld [vmem:[%s7361_s9 + $0x660] ss:$28 sps:$4 sm:$0xff]   ;;  %v5440_v52 = vld [vmem:[%s7361_s9 + $0x2ac] ss:$28 sps:$4 sm:$0xff]  }
 0x3f6   :  { %v2426_v59 = vmax.f32 %v2380_v54, 0.0  ;;  %v2428_v60 = vmax.f32 %v2421_v55, 0.0  ;;  %v6835_v4 = vpack.c.bf16 %v2425_v56, %v2425_v56  ;;  %v6837_v29 = vpack.c.bf16 %v2427_v57, %v2427_v57  ;;  %v5443_v26 = vld [vmem:[%s7361_s9 + $0x62c] ss:$28 sps:$4 sm:$0xff]   ;;  %v5446_v56 = vld [vmem:[%s7361_s9 + $0x274] ss:$28 sps:$4 sm:$0xff]  }
 0x3f7   :  { %v2382_v61 = vpop.f32.mrf.mxu1  ;;  %v2423_v62 = vpop.f32.mrf.mxu0  ;;  %v5438_v54 = vld [vmem:[%s7361_s9 + $0x2a8] ss:$28 sps:$4 sm:$0xff]   ;;  %v5449_v57 = vld [vmem:[%s7361_s9 + $0x5f4] ss:$28 sps:$4 sm:$0xff]  }
 0x3f8   :  { %v6825_v63 = vpack.c.bf16 %v2426_v59, %v2426_v59  ;;  %v6827_v0 = vpack.c.bf16 %v2428_v60, %v2428_v60  ;;  %v5441_v55 = vld [vmem:[%s7361_s9 + $0x628] ss:$28 sps:$4 sm:$0xff]   ;;  %v5444_v31 = vld [vmem:[%s7361_s9 + $0x270] ss:$28 sps:$4 sm:$0xff]   ;;  %v5452_v59 = vld [vmem:[%s7361_s9 + $0x23c] ss:$28 sps:$4 sm:$0xff]  }
 0x3f9   :  { %v5447_v58 = vld [vmem:[%s7361_s9 + $0x5f0] ss:$28 sps:$4 sm:$0xff]   ;;  %v5455_v60 = vld [vmem:[%s7361_s9 + $0x5bc] ss:$28 sps:$4 sm:$0xff]  }
 0x3fa   :  { %3910 = vmatprep.mubr.bf16.mxu1 %v6825_v63  ;;  %3951 = vmatprep.mubr.bf16.mxu0 %v6827_v0  ;;  %v5450_v61 = vld [vmem:[%s7361_s9 + $0x238] ss:$28 sps:$4 sm:$0xff]  }
 0x3fb   :  { %3911 = vmatmul.mubr.bf16.vlgmr.msra.gmra.mxu1 %v6835_v4  ;;  %3952 = vmatmul.mubr.bf16.vlgmr.msra.gmra.mxu0 %v6837_v29  ;;  %v5453_v62 = vld [vmem:[%s7361_s9 + $0x5b8] ss:$28 sps:$4 sm:$0xff]  }
 0x3fc   :  { %3961 = vmatpush1.bf16.msra.mxu1 %v5372_v1  ;;  %4002 = vmatpush1.bf16.msra.mxu0 %v5375_v2  ;;  %v5458_v1 = vld [vmem:[%s7361_s9 + $0x204] ss:$28 sps:$4 sm:$0xff]  }
 0x3fd   :  { %3992 = vmatprep.mubr.bf16.mxu1 %v6825_v63  ;;  %4033 = vmatprep.mubr.bf16.mxu0 %v6827_v0  ;;  %v5461_v2 = vld [vmem:[%s7361_s9 + $0x584] ss:$28 sps:$4 sm:$0xff]  }
 0x3fe   :  { %3962 = vmatprep.subr.bf16.mxu1 %v5380_v5  ;;  %4003 = vmatprep.subr.bf16.mxu0 %v5383_v6  ;;  %v5456_v5 = vld [vmem:[%s7361_s9 + $0x200] ss:$28 sps:$4 sm:$0xff]  }
 0x3ff   :  { %v5459_v6 = vld [vmem:[%s7361_s9 + $0x580] ss:$28 sps:$4 sm:$0xff]  }
 0x400   :  { %3963 = vmatpush1.bf16.msra.mxu1 %v5378_v7  ;;  %4004 = vmatpush1.bf16.msra.mxu0 %v5381_v8  ;;  %v5464_v7 = vld [vmem:[%s7361_s9 + $0x1cc] ss:$28 sps:$4 sm:$0xff]  }
 0x401   :  { %3964 = vmatprep.subr.bf16.mxu1 %v5386_v9  ;;  %4005 = vmatprep.subr.bf16.mxu0 %v5389_v10  ;;  %v5467_v8 = vld [vmem:[%s7361_s9 + $0x54c] ss:$28 sps:$4 sm:$0xff]  }
 0x402   :  { %v5462_v9 = vld [vmem:[%s7361_s9 + $0x1c8] ss:$28 sps:$4 sm:$0xff]  }
 0x403   :  { %v5465_v10 = vld [vmem:[%s7361_s9 + $0x548] ss:$28 sps:$4 sm:$0xff]  }
 0x404   :  { %3965 = vmatpush1.bf16.msra.mxu1 %v5384_v11  ;;  %4006 = vmatpush1.bf16.msra.mxu0 %v5387_v12  ;;  %v5470_v11 = vld [vmem:[%s7361_s9 + $0x19c] ss:$28 sps:$4 sm:$0xff]  }
 0x405   :  { %3966 = vmatprep.subr.bf16.mxu1 %v5392_v14  ;;  %4007 = vmatprep.subr.bf16.mxu0 %v5395_v15  ;;  %v5473_v12 = vld [vmem:[%s7361_s9 + $0x51c] ss:$28 sps:$4 sm:$0xff]  }
 0x406   :  { %v5468_v14 = vld [vmem:[%s7361_s9 + $0x198] ss:$28 sps:$4 sm:$0xff]  }
 0x407   :  { %v5471_v15 = vld [vmem:[%s7361_s9 + $0x518] ss:$28 sps:$4 sm:$0xff]  }
 0x408   :  { %3967 = vmatpush1.bf16.msra.mxu1 %v5390_v16  ;;  %4008 = vmatpush1.bf16.msra.mxu0 %v5393_v17  ;;  %v5476_v16 = vld [vmem:[%s7361_s9 + $0x164] ss:$28 sps:$4 sm:$0xff]  }
 0x409   :  { %3968 = vmatprep.subr.bf16.mxu1 %v5398_v18  ;;  %4009 = vmatprep.subr.bf16.mxu0 %v5401_v21  ;;  %v5479_v17 = vld [vmem:[%s7361_s9 + $0x4e4] ss:$28 sps:$4 sm:$0xff]  }
 0x40a   :  { %v5474_v18 = vld [vmem:[%s7361_s9 + $0x160] ss:$28 sps:$4 sm:$0xff]  }
 0x40b   :  { %v5477_v21 = vld [vmem:[%s7361_s9 + $0x4e0] ss:$28 sps:$4 sm:$0xff]  }
 0x40c   :  { %3969 = vmatpush1.bf16.msra.mxu1 %v5396_v22  ;;  %4010 = vmatpush1.bf16.msra.mxu0 %v5399_v24  ;;  %v5482_v22 = vld [vmem:[%s7361_s9 + $0x12c] ss:$28 sps:$4 sm:$0xff]  }
 0x40d   :  { %3970 = vmatprep.subr.bf16.mxu1 %v5404_v27  ;;  %4011 = vmatprep.subr.bf16.mxu0 %v5407_v28  ;;  %v5485_v24 = vld [vmem:[%s7361_s9 + $0x4ac] ss:$28 sps:$4 sm:$0xff]  }
 0x40e   :  { %v5480_v27 = vld [vmem:[%s7361_s9 + $0x128] ss:$28 sps:$4 sm:$0xff]  }
 0x40f   :  { %v5483_v28 = vld [vmem:[%s7361_s9 + $0x4a8] ss:$28 sps:$4 sm:$0xff]  }
 0x410   :  { %3971 = vmatpush1.bf16.msra.mxu1 %v5402_v30  ;;  %4012 = vmatpush1.bf16.msra.mxu0 %v5405_v32  ;;  %v5488_v30 = vld [vmem:[%s7361_s9 + $0xf4] ss:$28 sps:$4 sm:$0xff]  }
 0x411   :  { %3972 = vmatprep.subr.bf16.mxu1 %v5410_v34  ;;  %4013 = vmatprep.subr.bf16.mxu0 %v5413_v35  ;;  %v5491_v32 = vld [vmem:[%s7361_s9 + $0x474] ss:$28 sps:$4 sm:$0xff]  }
 0x412   :  { %v5486_v34 = vld [vmem:[%s7361_s9 + $0xf0] ss:$28 sps:$4 sm:$0xff]  }
 0x413   :  { %v5489_v35 = vld [vmem:[%s7361_s9 + $0x470] ss:$28 sps:$4 sm:$0xff]  }
 0x414   :  { %3973 = vmatpush1.bf16.msra.mxu1 %v5408_v36  ;;  %4014 = vmatpush1.bf16.msra.mxu0 %v5411_v13  ;;  %v5494_v36 = vld [vmem:[%s7361_s9 + $0xbc] ss:$28 sps:$4 sm:$0xff]  }
 0x415   :  { %3974 = vmatprep.subr.bf16.mxu1 %v5416_v37  ;;  %4015 = vmatprep.subr.bf16.mxu0 %v5419_v38  ;;  %v5497_v13 = vld [vmem:[%s7361_s9 + $0x43c] ss:$28 sps:$4 sm:$0xff]  }
 0x416   :  { %v5492_v37 = vld [vmem:[%s7361_s9 + $0xb8] ss:$28 sps:$4 sm:$0xff]  }
 0x417   :  { %v5495_v38 = vld [vmem:[%s7361_s9 + $0x438] ss:$28 sps:$4 sm:$0xff]  }
 0x418   :  { %3975 = vmatpush1.bf16.msra.mxu1 %v5414_v39  ;;  %4016 = vmatpush1.bf16.msra.mxu0 %v5417_v40  ;;  %v5500_v39 = vld [vmem:[%s7361_s9 + $0x84] ss:$28 sps:$4 sm:$0xff]  }
 0x419   :  { %3976 = vmatprep.subr.bf16.mxu1 %v5422_v41  ;;  %4017 = vmatprep.subr.bf16.mxu0 %v5425_v42  ;;  %v5503_v40 = vld [vmem:[%s7361_s9 + $0x404] ss:$28 sps:$4 sm:$0xff]  }
 0x41a   :  { %v5498_v41 = vld [vmem:[%s7361_s9 + $0x80] ss:$28 sps:$4 sm:$0xff]  }
 0x41b   :  { %v5501_v42 = vld [vmem:[%s7361_s9 + $0x400] ss:$28 sps:$4 sm:$0xff]  }
 0x41c   :  { %3977 = vmatpush2.bf16.msra.mxu1 %v5420_v44  ;;  %4018 = vmatpush2.bf16.msra.mxu0 %v5423_v45  ;;  %v5506_v44 = vld [vmem:[%s7361_s9 + $0x4c] ss:$28 sps:$4 sm:$0xff]  }
 0x41d   :  { %3978 = vmatprep.subr.bf16.mxu1 %v5428_v46  ;;  %4019 = vmatprep.subr.bf16.mxu0 %v5431_v3  ;;  %v5509_v45 = vld [vmem:[%s7361_s9 + $0x3cc] ss:$28 sps:$4 sm:$0xff]  }
 0x41e   :  { %v5504_v46 = vld [vmem:[%s7361_s9 + $0x48] ss:$28 sps:$4 sm:$0xff]  }
 0x41f   :  { %v5507_v3 = vld [vmem:[%s7361_s9 + $0x3c8] ss:$28 sps:$4 sm:$0xff]  }
 0x420   :  { %3979 = vmatpush2.bf16.msra.mxu1 %v5426_v47  ;;  %4020 = vmatpush2.bf16.msra.mxu0 %v5429_v20  ;;  %v5512_v47 = vld [vmem:[%s7361_s9 + $0x14] ss:$28 sps:$4 sm:$0xff]  }
 0x421   :  { %3980 = vmatprep.subr.bf16.mxu1 %v5434_v48  ;;  %4021 = vmatprep.subr.bf16.mxu0 %v5437_v50  ;;  %v5515_v20 = vld [vmem:[%s7361_s9 + $0x394] ss:$28 sps:$4 sm:$0xff]  }
 0x422   :  { %v5510_v48 = vld [vmem:[%s7361_s9 + $0x10] ss:$28 sps:$4 sm:$0xff]  }
 0x423   :  { %v5513_v50 = vld [vmem:[%s7361_s9 + $0x390] ss:$28 sps:$4 sm:$0xff]  }
 0x424   :  { %3981 = vmatpush2.bf16.msra.mxu1 %v5432_v19  ;;  %4022 = vmatpush2.bf16.msra.mxu0 %v5435_v51  ;;  %v5518_v19 = vld [vmem:[%s7361_s9 + $0x35c] ss:$28 sps:$4 sm:$0xff]  }
 0x425   :  { %3982 = vmatprep.subr.bf16.mxu1 %v5440_v52  ;;  %4023 = vmatprep.subr.bf16.mxu0 %v5443_v26  ;;  %v5521_v51 = vld [vmem:[%s7361_s9 + $0x6dc] ss:$28 sps:$4 sm:$0xff]  }
 0x426   :  { %v5516_v52 = vld [vmem:[%s7361_s9 + $0x358] ss:$28 sps:$4 sm:$0xff]  }
 0x427   :  { %v5519_v26 = vld [vmem:[%s7361_s9 + $0x6d8] ss:$28 sps:$4 sm:$0xff]  }
 0x428   :  { %3983 = vmatpush2.bf16.msra.mxu1 %v5438_v54  ;;  %4024 = vmatpush2.bf16.msra.mxu0 %v5441_v55  ;;  %v5524_v54 = vld [vmem:[%s7361_s9 + $0x324] ss:$28 sps:$4 sm:$0xff]  }
 0x429   :  { %3984 = vmatprep.subr.bf16.mxu1 %v5446_v56  ;;  %4025 = vmatprep.subr.bf16.mxu0 %v5449_v57  ;;  %v5527_v55 = vld [vmem:[%s7361_s9 + $0x6a4] ss:$28 sps:$4 sm:$0xff]  }
 0x42a   :  { %v5522_v56 = vld [vmem:[%s7361_s9 + $0x320] ss:$28 sps:$4 sm:$0xff]  }
 0x42b   :  { %v5525_v57 = vld [vmem:[%s7361_s9 + $0x6a0] ss:$28 sps:$4 sm:$0xff]  }
 0x42c   :  { %3985 = vmatpush2.bf16.msra.mxu1 %v5444_v31  ;;  %4026 = vmatpush2.bf16.msra.mxu0 %v5447_v58  ;;  %v5530_v31 = vld [vmem:[%s7361_s9 + $0x2ec] ss:$28 sps:$4 sm:$0xff]  }
 0x42d   :  { %3986 = vmatprep.subr.bf16.mxu1 %v5452_v59  ;;  %4027 = vmatprep.subr.bf16.mxu0 %v5455_v60  ;;  %v5533_v58 = vld [vmem:[%s7361_s9 + $0x66c] ss:$28 sps:$4 sm:$0xff]  }
 0x42e   :  { %v5528_v59 = vld [vmem:[%s7361_s9 + $0x2e8] ss:$28 sps:$4 sm:$0xff]  }
 0x42f   :  { %v5531_v60 = vld [vmem:[%s7361_s9 + $0x668] ss:$28 sps:$4 sm:$0xff]  }
 0x430   :  { %3987 = vmatpush2.bf16.msra.mxu1 %v5450_v61  ;;  %4028 = vmatpush2.bf16.msra.mxu0 %v5453_v62  ;;  %v5536_v61 = vld [vmem:[%s7361_s9 + $0x2b4] ss:$28 sps:$4 sm:$0xff]  }
 0x431   :  { %3988 = vmatprep.subr.bf16.mxu1 %v5458_v1  ;;  %4029 = vmatprep.subr.bf16.mxu0 %v5461_v2  ;;  %v5539_v62 = vld [vmem:[%s7361_s9 + $0x634] ss:$28 sps:$4 sm:$0xff]  }
 0x432   :  { %v5534_v1 = vld [vmem:[%s7361_s9 + $0x2b0] ss:$28 sps:$4 sm:$0xff]  }
 0x433   :  { %v5537_v2 = vld [vmem:[%s7361_s9 + $0x630] ss:$28 sps:$4 sm:$0xff]  }
 0x434   :  { %3989 = vmatpush2.bf16.msra.mxu1 %v5456_v5  ;;  %4030 = vmatpush2.bf16.msra.mxu0 %v5459_v6  ;;  %v5542_v5 = vld [vmem:[%s7361_s9 + $0x27c] ss:$28 sps:$4 sm:$0xff]  }
 0x435   :  { %3990 = vmatprep.subr.bf16.mxu1 %v5464_v7  ;;  %4031 = vmatprep.subr.bf16.mxu0 %v5467_v8  ;;  %v5545_v6 = vld [vmem:[%s7361_s9 + $0x5fc] ss:$28 sps:$4 sm:$0xff]  }
 0x436   :  { %v5540_v7 = vld [vmem:[%s7361_s9 + $0x278] ss:$28 sps:$4 sm:$0xff]  }
 0x437   :  { %v5543_v8 = vld [vmem:[%s7361_s9 + $0x5f8] ss:$28 sps:$4 sm:$0xff]  }
 0x438   :  { %3991 = vmatpush2.bf16.msra.mxu1 %v5462_v9  ;;  %4032 = vmatpush2.bf16.msra.mxu0 %v5465_v10  ;;  %v5548_v9 = vld [vmem:[%s7361_s9 + $0x244] ss:$28 sps:$4 sm:$0xff]  }
 0x439   :  { %4042 = vmatprep.subr.bf16.mxu1 %v5470_v11  ;;  %4083 = vmatprep.subr.bf16.mxu0 %v5473_v12  ;;  %v5551_v10 = vld [vmem:[%s7361_s9 + $0x5c4] ss:$28 sps:$4 sm:$0xff]  }
 0x43a   :  { %v5546_v11 = vld [vmem:[%s7361_s9 + $0x240] ss:$28 sps:$4 sm:$0xff]  }
 0x43b   :  { %3993 = vmatmul.mubr.bf16.vlgmr.msra.gmra.mxu1 %v6835_v4  ;;  %4034 = vmatmul.mubr.bf16.vlgmr.msra.gmra.mxu0 %v6837_v29  ;;  %v5549_v12 = vld [vmem:[%s7361_s9 + $0x5c0] ss:$28 sps:$4 sm:$0xff]  }
 0x43c   :  { %4043 = vmatpush1.bf16.msra.mxu1 %v5468_v14  ;;  %4074 = vmatprep.mubr.bf16.mxu1 %v6825_v63  ;;  %v5554_v14 = vld [vmem:[%s7361_s9 + $0x20c] ss:$28 sps:$4 sm:$0xff]  }
 0x43d   :  { %4084 = vmatpush1.bf16.msra.mxu0 %v5471_v15  ;;  %4115 = vmatprep.mubr.bf16.mxu0 %v6827_v0  ;;  %v5557_v15 = vld [vmem:[%s7361_s9 + $0x58c] ss:$28 sps:$4 sm:$0xff]  }
 0x43e   :  { %4044 = vmatprep.subr.bf16.mxu1 %v5476_v16  ;;  %4085 = vmatprep.subr.bf16.mxu0 %v5479_v17  ;;  %v5552_v16 = vld [vmem:[%s7361_s9 + $0x208] ss:$28 sps:$4 sm:$0xff]  }
 0x43f   :  { %v5555_v17 = vld [vmem:[%s7361_s9 + $0x588] ss:$28 sps:$4 sm:$0xff]  }
 0x440   :  { %4045 = vmatpush1.bf16.msra.mxu1 %v5474_v18  ;;  %v5560_v18 = vld [vmem:[%s7361_s9 + $0x1d4] ss:$28 sps:$4 sm:$0xff]  }
 0x441   :  { %4086 = vmatpush1.bf16.msra.mxu0 %v5477_v21  ;;  %4046 = vmatprep.subr.bf16.mxu1 %v5482_v22  ;;  %v5563_v21 = vld [vmem:[%s7361_s9 + $0x554] ss:$28 sps:$4 sm:$0xff]  }
 0x442   :  { %4087 = vmatprep.subr.bf16.mxu0 %v5485_v24  ;;  %v5558_v22 = vld [vmem:[%s7361_s9 + $0x1d0] ss:$28 sps:$4 sm:$0xff]  }
 0x443   :  { %v5561_v24 = vld [vmem:[%s7361_s9 + $0x550] ss:$28 sps:$4 sm:$0xff]  }
 0x444   :  { %4047 = vmatpush1.bf16.msra.mxu1 %v5480_v27  ;;  %v5564_v27 = vld [vmem:[%s7361_s9 + $0x360] ss:$28 sps:$4 sm:$0xff]  }
 0x445   :  { %4088 = vmatpush1.bf16.msra.mxu0 %v5483_v28  ;;  %4048 = vmatprep.subr.bf16.mxu1 %v5488_v30  ;;  %v5565_v28 = vld [vmem:[%s7361_s9 + $0x6e0] ss:$28 sps:$4 sm:$0xff]  }
 0x446   :  { %4089 = vmatprep.subr.bf16.mxu0 %v5491_v32  ;;  %v5566_v30 = vld [vmem:[%s7361_s9 + $0x1a0] ss:$28 sps:$4 sm:$0xff]  }
 0x447   :  { %v5567_v32 = vld [vmem:[%s7361_s9 + $0x520] ss:$28 sps:$4 sm:$0xff]  }
 0x448   :  { %4049 = vmatpush1.bf16.msra.mxu1 %v5486_v34  ;;  %v5568_v34 = vld [vmem:[%s7361_s9 + $0x328] ss:$28 sps:$4 sm:$0xff]  }
 0x449   :  { %4090 = vmatpush1.bf16.msra.mxu0 %v5489_v35  ;;  %4050 = vmatprep.subr.bf16.mxu1 %v5494_v36  ;;  %v5569_v35 = vld [vmem:[%s7361_s9 + $0x6a8] ss:$28 sps:$4 sm:$0xff]  }
 0x44a   :  { %4091 = vmatprep.subr.bf16.mxu0 %v5497_v13  ;;  %v5570_v36 = vld [vmem:[%s7361_s9 + $0x168] ss:$28 sps:$4 sm:$0xff]  }
 0x44b   :  { %v5571_v13 = vld [vmem:[%s7361_s9 + $0x4e8] ss:$28 sps:$4 sm:$0xff]  }
 0x44c   :  { %4051 = vmatpush1.bf16.msra.mxu1 %v5492_v37  ;;  %v5572_v37 = vld [vmem:[%s7361_s9 + $0x2f0] ss:$28 sps:$4 sm:$0xff]  }
 0x44d   :  { %4092 = vmatpush1.bf16.msra.mxu0 %v5495_v38  ;;  %4052 = vmatprep.subr.bf16.mxu1 %v5500_v39  ;;  %v5573_v38 = vld [vmem:[%s7361_s9 + $0x670] ss:$28 sps:$4 sm:$0xff]  }
 0x44e   :  { %4093 = vmatprep.subr.bf16.mxu0 %v5503_v40  ;;  %v5575_v39 = vld [vmem:[%s7361_s9 + $0x4b0] ss:$28 sps:$4 sm:$0xff]   ;;  %v5577_v40 = vld [vmem:[%s7361_s9 + $0x638] ss:$28 sps:$4 sm:$0xff]  }
 0x450   :  { %4053 = vmatpush1.bf16.msra.mxu1 %v5498_v41  ;;  %v5578_v41 = vld [vmem:[%s7361_s9 + $0xf8] ss:$28 sps:$4 sm:$0xff]  }
 0x451   :  { %4094 = vmatpush1.bf16.msra.mxu0 %v5501_v42  ;;  %4054 = vmatprep.subr.bf16.mxu1 %v5506_v44  ;;  %v5579_v42 = vld [vmem:[%s7361_s9 + $0x478] ss:$28 sps:$4 sm:$0xff]   ;;  %v5580_v44 = vld [vmem:[%s7361_s9 + $0x280] ss:$28 sps:$4 sm:$0xff]  }
 0x452   :  { %4095 = vmatprep.subr.bf16.mxu0 %v5509_v45  ;;  %v5581_v45 = vld [vmem:[%s7361_s9 + $0x600] ss:$28 sps:$4 sm:$0xff]  }
 0x454   :  { %4055 = vmatpush1.bf16.msra.mxu1 %v5504_v46  ;;  %v5582_v46 = vld [vmem:[%s7361_s9 + $0xc0] ss:$28 sps:$4 sm:$0xff]  }
 0x455   :  { %4096 = vmatpush1.bf16.msra.mxu0 %v5507_v3  ;;  %4056 = vmatprep.subr.bf16.mxu1 %v5512_v47  ;;  %v5583_v3 = vld [vmem:[%s7361_s9 + $0x440] ss:$28 sps:$4 sm:$0xff]   ;;  %v5584_v47 = vld [vmem:[%s7361_s9 + $0x248] ss:$28 sps:$4 sm:$0xff]  }
 0x456   :  { %4097 = vmatprep.subr.bf16.mxu0 %v5515_v20  ;;  %v5585_v20 = vld [vmem:[%s7361_s9 + $0x5c8] ss:$28 sps:$4 sm:$0xff]  }
 0x458   :  { %4057 = vmatpush1.bf16.msra.mxu1 %v5510_v48  ;;  %v5586_v48 = vld [vmem:[%s7361_s9 + $0x88] ss:$28 sps:$4 sm:$0xff]  }
 0x459   :  { %4098 = vmatpush1.bf16.msra.mxu0 %v5513_v50  ;;  %4058 = vmatprep.subr.bf16.mxu1 %v5518_v19  ;;  %v5587_v50 = vld [vmem:[%s7361_s9 + $0x408] ss:$28 sps:$4 sm:$0xff]   ;;  %v5588_v19 = vld [vmem:[%s7361_s9 + $0x210] ss:$28 sps:$4 sm:$0xff]  }
 0x45a   :  { %4099 = vmatprep.subr.bf16.mxu0 %v5521_v51  ;;  %v5589_v51 = vld [vmem:[%s7361_s9 + $0x590] ss:$28 sps:$4 sm:$0xff]  }
 0x45c   :  { %4059 = vmatpush2.bf16.msra.mxu1 %v5516_v52  ;;  %v5590_v52 = vld [vmem:[%s7361_s9 + $0x50] ss:$28 sps:$4 sm:$0xff]  }
 0x45d   :  { %4100 = vmatpush2.bf16.msra.mxu0 %v5519_v26  ;;  %4060 = vmatprep.subr.bf16.mxu1 %v5524_v54  ;;  %v5591_v26 = vld [vmem:[%s7361_s9 + $0x3d0] ss:$28 sps:$4 sm:$0xff]   ;;  %v5592_v54 = vld [vmem:[%s7361_s9 + $0x1d8] ss:$28 sps:$4 sm:$0xff]  }
 0x45e   :  { %4101 = vmatprep.subr.bf16.mxu0 %v5527_v55  ;;  %v5593_v55 = vld [vmem:[%s7361_s9 + $0x558] ss:$28 sps:$4 sm:$0xff]  }
 0x460   :  { %4061 = vmatpush2.bf16.msra.mxu1 %v5522_v56  ;;  %v5594_v56 = vld [vmem:[%s7361_s9 + $0x18] ss:$28 sps:$4 sm:$0xff]  }
 0x461   :  { %4102 = vmatpush2.bf16.msra.mxu0 %v5525_v57  ;;  %4062 = vmatprep.subr.bf16.mxu1 %v5530_v31  ;;  %v5595_v57 = vld [vmem:[%s7361_s9 + $0x398] ss:$28 sps:$4 sm:$0xff]   ;;  %v7326_v31 = vld [vmem:[%s7362_s10] sm:$0x7f] }
 0x462   :  { %4103 = vmatprep.subr.bf16.mxu0 %v5533_v58  ;;  %v2694_v58 = vrot.slane %v7326_v31, %v6447_v23 }
 0x464   :  { %4063 = vmatpush2.bf16.msra.mxu1 %v5528_v59  ;;  %v2698_v59 = vrot.slane %v7326_v31, %v6453_v25 }
 0x465   :  { %4104 = vmatpush2.bf16.msra.mxu0 %v5531_v60  ;;  %4064 = vmatprep.subr.bf16.mxu1 %v5536_v61 }
 0x466   :  { %4105 = vmatprep.subr.bf16.mxu0 %v5539_v62 }
 0x468   :  { %4065 = vmatpush2.bf16.msra.mxu1 %v5534_v1 }
 0x469   :  { %4106 = vmatpush2.bf16.msra.mxu0 %v5537_v2  ;;  %4066 = vmatprep.subr.bf16.mxu1 %v5542_v5 }
 0x46a   :  { %4107 = vmatprep.subr.bf16.mxu0 %v5545_v6 }
 0x46c   :  { %4067 = vmatpush2.bf16.msra.mxu1 %v5540_v7 }
 0x46d   :  { %4108 = vmatpush2.bf16.msra.mxu0 %v5543_v8  ;;  %4068 = vmatprep.subr.bf16.mxu1 %v5548_v9 }
 0x46e   :  { %4109 = vmatprep.subr.bf16.mxu0 %v5551_v10 }
 0x470   :  { %4069 = vmatpush2.bf16.msra.mxu1 %v5546_v11 }
 0x471   :  { %4110 = vmatpush2.bf16.msra.mxu0 %v5549_v12  ;;  %4070 = vmatprep.subr.bf16.mxu1 %v5554_v14 }
 0x472   :  { %4111 = vmatprep.subr.bf16.mxu0 %v5557_v15 }
 0x474   :  { %4071 = vmatpush2.bf16.msra.mxu1 %v5552_v16 }
 0x475   :  { %4112 = vmatpush2.bf16.msra.mxu0 %v5555_v17  ;;  %4072 = vmatprep.subr.bf16.mxu1 %v5560_v18 }
 0x476   :  { %4113 = vmatprep.subr.bf16.mxu0 %v5563_v21 }
 0x478   :  { %4073 = vmatpush2.bf16.msra.mxu1 %v5558_v22 }
 0x479   :  { %4114 = vmatpush2.bf16.msra.mxu0 %v5561_v24  ;;  %4828 = vmatprep.subr.bf16.mxu1 %v5564_v27 }
 0x47a   :  { %4850 = vmatprep.subr.bf16.mxu0 %v5565_v28 }
 0x47b   :  { %4075 = vmatmul.mubr.bf16.vlgmr.msra.gmra.mxu1 %v6835_v4 }
 0x47c   :  { %4116 = vmatmul.mubr.bf16.vlgmr.msra.gmra.mxu0 %v6837_v29  ;;  %4829 = vmatpush3.bf16.msra.mxu1 %v5566_v30 }
 0x47d   :  { %4156 = vmatprep.mubr.bf16.mxu1 %v6825_v63  ;;  %4851 = vmatpush3.bf16.msra.mxu0 %v5567_v32  ;;  %v5574_v63 = vld [vmem:[%s7361_s9 + $0x130] ss:$28 sps:$4 sm:$0xff]  }
 0x47e   :  { %4196 = vmatprep.mubr.bf16.mxu0 %v6827_v0  ;;  %4830 = vmatprep.subr.bf16.mxu1 %v5568_v34  ;;  %v5576_v0 = vld [vmem:[%s7361_s9 + $0x2b8] ss:$28 sps:$4 sm:$0xff]   ;;  %s5642_s9 = smov [#allocation4]  }
 0x47f   :  { %4852 = vmatprep.subr.bf16.mxu0 %v5569_v35  ;;  %s4269_s10 = sshll.u32 %s5642_s9, 4  ;;  %s4270_s10 = int_to_ptr.vmem [resolvable:$true] %s4269_s10 }
 0x480   :  { %4831 = vmatpush3.bf16.msra.mxu1 %v5570_v36  ;;  %s5596_s15 = scalar_lea.vmem %s4270_s10, 32  ;;  %p5601_p1 = scmp.lt.s32.totalorder %s4270_s10, %s4270_s10 }
 0x481   :  { %4853 = vmatpush3.bf16.msra.mxu0 %v5571_v13  ;;  %4832 = vmatprep.subr.bf16.mxu1 %v5572_v37  ;;  %p5597_p0 = scmp.ne.s32.totalorder %s4270_s10, %s5596_s15  ;;  %p5602_p2 = scmp.lt.s32.totalorder %s5596_s15, %s5596_s15 }
 0x482   :  { %4854 = vmatprep.subr.bf16.mxu0 %v5573_v38 }
 0x483   :  { %p5603_p3 = por %p5602_p2, %p5601_p1 }
 0x484   :  { %4833 = vmatpush3.bf16.msra.mxu1 %v5574_v63 }
 0x485   :  { %4855 = vmatpush3.bf16.msra.mxu0 %v5575_v39  ;;  %4834 = vmatprep.subr.bf16.mxu1 %v5576_v0  ;;  %p5604_p4 = pnand %p5603_p3, %p5597_p0 }
 0x486   :  { %4856 = vmatprep.subr.bf16.mxu0 %v5577_v40 }
 0x488   :  { %4835 = vmatpush3.bf16.msra.mxu1 %v5578_v41 }
 0x489   :  { %4857 = vmatpush3.bf16.msra.mxu0 %v5579_v42  ;;  %4836 = vmatprep.subr.bf16.mxu1 %v5580_v44 }
 0x48a   :  { %4858 = vmatprep.subr.bf16.mxu0 %v5581_v45 }
 0x48c   :  { %4837 = vmatpush3.bf16.msra.mxu1 %v5582_v46 }
 0x48d   :  { %4859 = vmatpush3.bf16.msra.mxu0 %v5583_v3  ;;  %4838 = vmatprep.subr.bf16.mxu1 %v5584_v47 }
 0x48e   :  { %4860 = vmatprep.subr.bf16.mxu0 %v5585_v20 }
 0x490   :  { %4839 = vmatpush3.bf16.msra.mxu1 %v5586_v48 }
 0x491   :  { %4861 = vmatpush3.bf16.msra.mxu0 %v5587_v50  ;;  %4840 = vmatprep.subr.bf16.mxu1 %v5588_v19 }
 0x492   :  { %4862 = vmatprep.subr.bf16.mxu0 %v5589_v51 }
 0x494   :  { %4841 = vmatpush3.bf16.msra.mxu1 %v5590_v52 }
 0x495   :  { %4863 = vmatpush3.bf16.msra.mxu0 %v5591_v26  ;;  %4842 = vmatprep.subr.bf16.mxu1 %v5592_v54 }
 0x496   :  { %4864 = vmatprep.subr.bf16.mxu0 %v5593_v55 }
 0x498   :  { %4843 = vmatpush3.bf16.msra.mxu1 %v5594_v56 }
 0x499   :  { %4865 = vmatpush3.bf16.msra.mxu0 %v5595_v57 }
 0x49b   :  { %4157 = vmatmul.mubr.bf16.vlgmr.msra.gmra.mxu1 %v6835_v4 }
 0x49c   :  { %4197 = vmatmul.mubr.bf16.vlgmr.msra.gmra.mxu0 %v6837_v29 }
 0x4bb   :  { %v3912_v60 = vpop.f32.mrf.mxu1  ;;  %v3953_v61 = vpop.f32.mrf.mxu0 }
 0x4bc   :  { %v3913_v62 = vadd.f32 %v3912_v60, %v2694_v58 }
 0x4bd   :  { %v3914_v1 = vpop.f32.mrf.mxu1  ;;  %v3955_v2 = vpop.f32.mrf.mxu0 }
 0x4be   :  { %v3954_v5 = vadd.f32 %v3953_v61, %v3913_v62  ;;  %v3915_v4 = vadd.f32 %v3914_v1, %v2698_v59 }
 0x4bf   :  { %v3916_v6 = vpop.f32.mrf.mxu1  ;;  %v3957_v29 = vpop.f32.mrf.mxu0 }
 0x4c0   :  { %v3956_v7 = vadd.f32 %v3955_v2, %v3915_v4 }
 0x4c1   :  { %v3917_v8 = vpop.f32.mrf.mxu1  ;;  %v3958_v9 = vpop.f32.mrf.mxu0 }
 0x4c2   :  { %v4211_v10 = vcombine.low %v3954_v5, %v3956_v7 }
 0x4c3   :  { %5607 = shalt.err (!%p5604_p4)
}
 0x4c4   :  { %4272 = dma.vmem_to_hbm [thread:$0]  %s4270_s10, 32, %s7364_s12, [#allocation5]   ;;  %v2702_v23 = vrot.slane %v7326_v31, %v6459_v33  ;;  %v2706_v25 = vrot.slane %v7326_v31, %v6462_v53  ;;  %v4219_v32 = vrot.slane %v4211_v10, %v5844_v49  ;;  %v2713_v0 = vsub.s32 5, %v5826_v43 }
 0x4c5   :  { %v2709_v40 = vsub.s32 4, %v5826_v43  ;;  %v2717_v45 = vsub.s32 6, %v5826_v43  ;;  %vm4247_vm1 = vcmask 1041408   ;;  %vm4248_vm2 = vcmask 1043458   ;;  %s5643_s12 = smov [#allocation2]  }
 0x4c6   :  { %v2714_v41 = vrot.slane %v7326_v31, %v2713_v0  ;;  %vm4249_vm3 = vmor %vm4248_vm2, %vm4247_vm1  ;;  %vm4250_vm4 = vcmask 128004   ;;  %s4259_s18 = sshll.u32 %s5643_s12, 4  ;;  %s4260_s18 = int_to_ptr.vmem [resolvable:$true] %s4259_s18 }
 0x4c7   :  { %v2710_v42 = vrot.slane %v7326_v31, %v2709_v40  ;;  %v2718_v48 = vrot.slane %v7326_v31, %v2717_v45  ;;  %vm4251_vm5 = vmor %vm4250_vm4, %vm4249_vm3  ;;  %s5616_s19 = scalar_lea.vmem %s4260_s18, 224  ;;  %p5621_p6 = scmp.lt.s32.totalorder %s4260_s18, %s4260_s18 }
 0x4c8   :  { %p5617_p5 = scmp.ne.s32.totalorder %s4260_s18, %s5616_s19  ;;  %p5622_p7 = scmp.lt.s32.totalorder %s5616_s19, %s5616_s19 }
 0x4ca   :  { %p5623_p8 = por %p5622_p7, %p5621_p6 }
 0x4cc   :  { %p5624_p9 = pnand %p5623_p8, %p5617_p5 }
 0x4fb   :  { %v3994_v11 = vpop.f32.mrf.mxu1  ;;  %v4035_v12 = vpop.f32.mrf.mxu0 }
 0x4fc   :  { %v3995_v14 = vadd.f32 %v3994_v11, %v2702_v23 }
 0x4fd   :  { %v3996_v15 = vpop.f32.mrf.mxu1  ;;  %v4037_v16 = vpop.f32.mrf.mxu0 }
 0x4fe   :  { %v3997_v17 = vadd.f32 %v3996_v15, %v2706_v25  ;;  %v4036_v22 = vadd.f32 %v4035_v12, %v3995_v14 }
 0x4ff   :  { %v3998_v18 = vpop.f32.mrf.mxu1  ;;  %v4039_v21 = vpop.f32.mrf.mxu0 }
 0x500   :  { %v4038_v24 = vadd.f32 %v4037_v16, %v3997_v17 }
 0x501   :  { %v3999_v27 = vpop.f32.mrf.mxu1  ;;  %v4040_v28 = vpop.f32.mrf.mxu0 }
 0x502   :  { %v4212_v30 = vcombine.low %v4036_v22, %v4038_v24 }
 0x504   :  { %v4226_v33 = vrot.slane %v4212_v30, %v5844_v49 }
 0x506   :  { %v4227_v34 = vcombine.low %v4219_v32, %v4226_v33 }
 0x508   :  { %4246 = vst [vmem:[#allocation2] sm:$0xff] %v4227_v34 }
 0x53b   :  { %v4076_v53 = vpop.f32.mrf.mxu1 }
 0x53c   :  { %v4117_v35 = vpop.f32.mrf.mxu0  ;;  %v4077_v46 = vadd.f32 %v4076_v53, %v2710_v42 }
 0x53d   :  { %v4078_v36 = vpop.f32.mrf.mxu1 }
 0x53e   :  { %v4119_v13 = vpop.f32.mrf.mxu0  ;;  %v4079_v44 = vadd.f32 %v4078_v36, %v2714_v41  ;;  %v4118_v19 = vadd.f32 %v4117_v35, %v4077_v46 }
 0x53f   :  { %v4080_v37 = vpop.f32.mrf.mxu1 }
 0x540   :  { %v4121_v38 = vpop.f32.mrf.mxu0  ;;  %v4120_v47 = vadd.f32 %v4119_v13, %v4079_v44 }
 0x541   :  { %v4081_v63 = vpop.f32.mrf.mxu1 }
 0x542   :  { %v4122_v39 = vpop.f32.mrf.mxu0  ;;  %v4228_v54 = vcombine.low %v4118_v19, %v4120_v47 }
 0x544   :  { %v4235_v31 = vrot.slane %v4228_v54, %v5844_v49 }
 0x55b   :  { %v4844_v3 = vpop.f32.mrf.mxu1 }
 0x55c   :  { %v4866_v20 = vpop.f32.mrf.mxu0 }
 0x55d   :  { %v4845_v50 = vpop.f32.mrf.mxu1 }
 0x55e   :  { %v4846_v51 = vadd.f32 %v4845_v50, %v4844_v3  ;;  %v4867_v52 = vpop.f32.mrf.mxu0 }
 0x55f   :  { %v4847_v26 = vpop.f32.mrf.mxu1  ;;  %v4868_v56 = vadd.f32 %v4867_v52, %v4866_v20 }
 0x560   :  { %v4159_v55 = vadd.f32 %v4846_v51, %v2718_v48  ;;  %v4869_v57 = vpop.f32.mrf.mxu0 }
 0x561   :  { %v4848_v58 = vpop.f32.mrf.mxu1 }
 0x562   :  { %v4199_v59 = vadd.f32 %v4868_v56, %v4159_v55  ;;  %v4870_v43 = vpop.f32.mrf.mxu0 }
 0x564   :  { %v4242_v60 = vrot.slane %v4199_v59, %v5844_v49 }
 0x566   :  { %v4243_v61 = vcombine.low %v4235_v31, %v4242_v60 }
 0x568   :  { %4252 = vst.msk [vmem:[#allocation2 + $0x8] sm:$0x3f] %vm4251_vm5, %v4243_v61 }
 0x569   :  { %5627 = shalt.err (!%p5624_p9)
}
 0x56a   :  { %4262 = dma.vmem_to_hbm [thread:$0]  %s4260_s18, 224, %s7363_s11, [#allocation3]  }
 0x56b   :  { %5636 = dma.done.wait [#allocation3], 224  }
 0x56c   :  { %5637 = vsyncadd [#allocation3], 4294967072 }
 0x56d   :  { %5638 = dma.done.wait [#allocation5], 32  }
 0x56e   :  { %5639 = vsyncadd [#allocation5], 4294967264 }
 0x56f   :  { %4279 = vsyncpa [#allocation3], 1 }
 0x570   :  { %4280 = vsyncpa [#allocation5], 1 }

</bundles_post_ra>
